<compile_context>
chip_gen: v5e
topology: v5e:2x2
jax: 0.10.0
libtpu: 0.0.40
codegen_flags: <defaults>
</compile_context>

<pallas_src>
import math
import functools

import jax
import jax.numpy as jnp
from jax.experimental import pallas as pl
from jax.experimental.pallas import tpu as pltpu

LN_EPS = 1e-5           # torch.nn.LayerNorm default
MASK_NEG = -10000000.0  # GlobalGraph.get_extended_attention_mask constant


def _round_up(x, m):
    return ((x + m - 1) // m) * m


# ---------------------------------------------------------------------------
# SubGraph kernel: Pb polylines per grid step.  depth x (Linear H->H/2,
# LayerNorm, ReLU, masked max over vectors, ReLU); the concat is replaced by a
# split matmul, the final (unmasked) max over vectors closes the layer stack.
# ---------------------------------------------------------------------------
def subgraph_kernel(x_ref, mask_ref, w_ref, b_ref, g_ref, beta_ref, o_ref,
                    *, depth, Pb, V, H):
    Hh = H // 2
    M = Pb * V
    x = x_ref[...].reshape(M, H)                 # (Pb*V, H) — MXU M dim filled
    mask3 = mask_ref[...]                        # (Pb, V, 1) additive mask (native layout)
    b = b_ref[...]                               # (depth, Hh) f32
    g = g_ref[...]
    bt = beta_ref[...]

    # (2*Hh, 2) 0/1 selection matrix: one MXU matmul over [z | z*z] yields
    # [sum z, sum z^2] per row — replaces the two XLU lane reductions / layer.
    ridx = jax.lax.broadcasted_iota(jnp.int32, (2 * Hh, 2), 0)
    cidx = jax.lax.broadcasted_iota(jnp.int32, (2 * Hh, 2), 1)
    first_half = (ridx < Hh).astype(jnp.float32)
    col0 = (cidx == 0).astype(jnp.float32)
    sel = first_half * col0 + (1.0 - first_half) * (1.0 - col0)     # (2*Hh, 2)

    def mlp(z_lin, l):
        """bias-add -> LayerNorm (MXU-fused stats) -> ReLU on an (M, Hh) tile."""
        z = z_lin + b[l:l + 1]                                       # f32
        zcat = jnp.concatenate([z, z * z], axis=-1)                  # (M, 2*Hh) f32
        moments = jnp.dot(zcat, sel,
                          preferred_element_type=jnp.float32) * (1.0 / Hh)   # (M, 2)
        mu = moments[:, 0:1]
        var = moments[:, 1:2] - mu * mu                              # one-pass variance
        zn = (z - mu) * jax.lax.rsqrt(var + LN_EPS)
        return jnp.maximum(zn * g[l:l + 1] + bt[l:l + 1], 0.0)

    # Layer 0: full-H input (bf16 MXU operands, f32 accumulation).
    z = mlp(jnp.dot(x.astype(jnp.bfloat16), w_ref[0],
                    preferred_element_type=jnp.float32), 0)          # (M, Hh)
    z3 = z.reshape(Pb, V, Hh)
    mh = jnp.maximum(jnp.max(z3 + mask3, axis=1), 0.0)               # (Pb, Hh)

    # Layers 1..depth-1: input is conceptually cat(z, broadcast(mh)); compute
    # the matmul as z @ W[:Hh] + broadcast_over_V(mh @ W[Hh:]) (no concat).
    # (v5e note: if MXU-bound there, the concat form with K=H fills its
    #  128-deep arrays better; the split wins on v6e/v7x.)
    for l in range(1, depth):
        wl = w_ref[l]                                                # (H, Hh) bf16
        z_part = jnp.dot(z.astype(jnp.bfloat16), wl[:Hh, :],
                         preferred_element_type=jnp.float32)         # (M, Hh)
        m_part = jnp.dot(mh.astype(jnp.bfloat16), wl[Hh:, :],
                         preferred_element_type=jnp.float32)         # (Pb, Hh)
        lin = z_part.reshape(Pb, V, Hh) + m_part[:, None, :]
        z = mlp(lin.reshape(M, Hh), l)
        z3 = z.reshape(Pb, V, Hh)
        mh = jnp.maximum(jnp.max(z3 + mask3, axis=1), 0.0)

    # sub_vec = max over V of cat(z, broadcast(mh)) = cat(max_V(z), mh).
    o_ref[...] = jnp.concatenate([jnp.max(z3, axis=1), mh], axis=-1)  # (Pb, H)


def run_subgraph(polylines, mask3d, params, *, block_p=256, input_buffers=2):
    P, V, H = polylines.shape
    Hh = H // 2
    depth = params["W"].shape[0]

    # Pick Pb: as large as possible (amortize ~0.35us/step, big VMEM on v6e),
    # but keep >= 2 grid steps whenever P allows so v7x's 2 TCs both get work.
    Pp8 = _round_up(P, 8)
    Pb = min(block_p, Pp8)
    if Pp8 > 8:
        Pb = min(Pb, _round_up((Pp8 + 1) // 2, 8))
    Pp = _round_up(P, Pb)
    if Pp != P:
        polylines = jnp.pad(polylines, ((0, Pp - P), (0, 0), (0, 0)))
        mask3d = jnp.pad(mask3d, ((0, Pp - P), (0, 0), (0, 0)))

    w_bf16 = params["W"].astype(jnp.bfloat16)        # bf16 MXU weights, halves weight DMA

    # input_buffers=3 is the v5e knob (slower HBM): deeper pipeline on the big input.
    poly_kwargs = {}
    if input_buffers != 2:
        poly_kwargs["pipeline_mode"] = pl.Buffered(input_buffers)

    kernel = functools.partial(subgraph_kernel, depth=depth, Pb=Pb, V=V, H=H)
    out = pl.pallas_call(
        kernel,
        out_shape=jax.ShapeDtypeStruct((Pp, H), jnp.float32),
        grid=(Pp // Pb,),
        in_specs=[
            pl.BlockSpec((Pb, V, H), lambda p: (p, 0, 0), **poly_kwargs),
            pl.BlockSpec((Pb, V, 1), lambda p: (p, 0, 0)),
            pl.BlockSpec((depth, H, Hh), lambda p: (0, 0, 0)),
            pl.BlockSpec((depth, Hh), lambda p: (0, 0)),
            pl.BlockSpec((depth, Hh), lambda p: (0, 0)),
            pl.BlockSpec((depth, Hh), lambda p: (0, 0)),
        ],
        out_specs=pl.BlockSpec((Pb, H), lambda p: (p, 0)),
        compiler_params=pltpu.CompilerParams(
            dimension_semantics=("parallel",),          # megacore split on v7x
            vmem_limit_bytes=64 * 1024 * 1024,
        ),
    )(polylines, mask3d, w_bf16, params["b"], params["gamma"], params["beta"])
    return out[:P]


# ---------------------------------------------------------------------------
# GlobalGraph kernel: single-head self-attention; only context[:, 0, :] is
# needed, so only the position-0 query is computed.  Bb samples per grid step;
# each sample's rows are gathered from the sub-vector table with pl.ds using
# scalar-prefetched offsets/counts (no host-side (B, N, H) packing loop).
# K/V projections are fused into one (H, 2H) matmul; 1/sqrt(H) is pre-folded
# into Wq/bq; the row-0 validity mask is built in-kernel from the counts.
# ---------------------------------------------------------------------------
def global_graph_kernel(off_ref, cnt_ref, sub_ref, wq_ref, bq_ref, wkv_ref,
                        bkv_ref, o_ref, *, Bb, N, H, B):
    base = pl.program_id(0) * Bb
    xs, qs, ms = [], [], []
    for j in range(Bb):
        s = jnp.minimum(base + j, B - 1)          # clamp padded batch rows
        off = off_ref[s]
        cnt = cnt_ref[s]
        xj = sub_ref[pl.ds(off, N), :]            # (N, H) this sample's polylines (+ slack)
        xs.append(xj)
        qs.append(xj[0:1, :])                     # query = position 0
        ms.append((jax.lax.broadcasted_iota(jnp.int32, (1, 1, N), 2)
                   < cnt).astype(jnp.float32))    # (1, 1, N) row-0 validity
    xflat = jnp.concatenate(xs, axis=0)           # (Bb*N, H)
    q_rows = jnp.concatenate(qs, axis=0)          # (Bb, H)
    m = jnp.concatenate(ms, axis=0)               # (Bb, 1, N)

    # Projections: bf16 MXU operands, f32 accumulation, dense M dims.
    q = (jnp.dot(q_rows.astype(jnp.bfloat16), wq_ref[...],
                 preferred_element_type=jnp.float32) + bq_ref[...])[:, None, :]   # (Bb,1,H)
    kv = jnp.dot(xflat.astype(jnp.bfloat16), wkv_ref[...],
                 preferred_element_type=jnp.float32) + bkv_ref[...]               # (Bb*N,2H)
    kv = kv.reshape(Bb, N, 2 * H)
    k = kv[:, :, :H]
    v = kv[:, :, H:]

    # scores = q . k^T (batched, no explicit transpose); 1/sqrt(H) already in Wq/bq.
    scores = jnp.einsum('bqh,bkh->bqk', q.astype(jnp.bfloat16), k.astype(jnp.bfloat16),
                        preferred_element_type=jnp.float32)                       # (Bb,1,N)
    scores = scores + (1.0 - m) * MASK_NEG
    scores = scores - jnp.max(scores, axis=-1, keepdims=True)
    p = jnp.exp(scores)
    p = p * pl.reciprocal(jnp.sum(p, axis=-1, keepdims=True), approx=True)        # EUP
    ctx = jnp.einsum('bqk,bkh->bqh', p.astype(jnp.bfloat16), v.astype(jnp.bfloat16),
                     preferred_element_type=jnp.float32)                          # (Bb,1,H)
    o_ref[...] = ctx[:, 0, :]                                                     # (Bb, H)


def run_global_graph(sub_vector, offsets, counts, params, *, N, block_b=8):
    P, H = sub_vector.shape
    B = int(offsets.shape[0])

    # Bb: dense (>=8) output sublanes; keep >= 2 grid steps when B allows (v7x).
    Bpad8 = _round_up(B, 8)
    Bb = min(block_b, Bpad8)
    if Bpad8 > 8:
        Bb = min(Bb, _round_up((Bpad8 + 1) // 2, 8))
    B_pad = _round_up(max(B, Bb), Bb)

    # Pad the sub-vector table so every in-kernel pl.ds(off, N) read is in bounds.
    P_pad = _round_up(P + N, 8)
    sub_pad = jnp.pad(sub_vector, ((0, P_pad - P), (0, 0)))

    scale = 1.0 / math.sqrt(H)                     # head_size == H for num_heads == 1
    wq = (params["Wqkv"][0] * scale).astype(jnp.bfloat16)
    bq = (params["bqkv"][0] * scale).reshape(1, H)
    wkv = jnp.concatenate([params["Wqkv"][1], params["Wqkv"][2]],
                          axis=-1).astype(jnp.bfloat16)                        # (H, 2H)
    bkv = jnp.concatenate([params["bqkv"][1], params["bqkv"][2]]).reshape(1, 2 * H)

    kernel = functools.partial(global_graph_kernel, Bb=Bb, N=N, H=H, B=B)
    out = pl.pallas_call(
        kernel,
        out_shape=jax.ShapeDtypeStruct((B_pad, H), jnp.float32),
        grid_spec=pltpu.PrefetchScalarGridSpec(
            num_scalar_prefetch=2,                 # offsets, counts -> SMEM
            grid=(B_pad // Bb,),
            in_specs=[
                pl.BlockSpec((P_pad, H), lambda b, off, cnt: (0, 0)),
                pl.BlockSpec((H, H), lambda b, off, cnt: (0, 0)),
                pl.BlockSpec((1, H), lambda b, off, cnt: (0, 0)),
                pl.BlockSpec((H, 2 * H), lambda b, off, cnt: (0, 0)),
                pl.BlockSpec((1, 2 * H), lambda b, off, cnt: (0, 0)),
            ],
            out_specs=pl.BlockSpec((Bb, H), lambda b, off, cnt: (b, 0)),
        ),
        compiler_params=pltpu.CompilerParams(
            dimension_semantics=("parallel",),
            vmem_limit_bytes=64 * 1024 * 1024,
        ),
    )(offsets, counts, sub_pad, wq, bq, wkv, bkv)
    return out[:B]


# ---------------------------------------------------------------------------
# VectorNet forward (train path, up to the global vector).
# ---------------------------------------------------------------------------
def vectornet_forward(params, polylines, poly_num, attention_mask,
                      tar_candidate=None, tar_candidate_mask=None):
    P, V, H = polylines.shape

    # SubGraph additive mask stays in its native (P, V, 1) layout.
    sub_vector = run_subgraph(polylines, attention_mask.astype(jnp.float32),
                              params["sub"])                                  # (P, H)

    # Scalar-prefetch glue: per-sample row offsets/counts (poly_num is a static
    # Python list) instead of packing a (B, N, H) tensor on the host.
    N = max(poly_num)
    counts = jnp.asarray(poly_num, dtype=jnp.int32)
    offsets = jnp.concatenate([jnp.zeros((1,), jnp.int32),
                               jnp.cumsum(counts)[:-1].astype(jnp.int32)])

    global_vector = run_global_graph(sub_vector, offsets, counts,
                                     params["glob"], N=N)                     # (B, H)
    # TODO(synk): TNTDecoder(global_vector, tar_candidate, ...) source not provided.
    return global_vector


# ---------------------------------------------------------------------------
# Pure-JAX f32 reference (mirrors the PyTorch math) for correctness checking.
# ---------------------------------------------------------------------------
def reference_forward(params, polylines, poly_num, attention_mask):
    P, V, H = polylines.shape
    Hh = H // 2
    h = polylines
    for l in range(params["sub"]["W"].shape[0]):
        z = jnp.einsum("pvh,ho->pvo", h, params["sub"]["W"][l]) + params["sub"]["b"][l]
        mu = jnp.mean(z, axis=-1, keepdims=True)
        var = jnp.mean((z - mu) ** 2, axis=-1, keepdims=True)
        z = (z - mu) / jnp.sqrt(var + LN_EPS)
        z = z * params["sub"]["gamma"][l] + params["sub"]["beta"][l]
        z = jax.nn.relu(z)
        mh = jax.nn.relu(jnp.max(z + attention_mask, axis=1, keepdims=True))
        h = jnp.concatenate([z, jnp.broadcast_to(mh, (P, V, Hh))], axis=-1)
    sub_vec = jnp.max(h, axis=1)

    B, N = len(poly_num), max(poly_num)
    gi = jnp.zeros((B, N, H), jnp.float32)
    gm = jnp.zeros((B, N, N), jnp.float32)
    idx = 0
    for i, length in enumerate(poly_num):
        gi = gi.at[i, :length, :].set(sub_vec[idx:idx + length])
        gm = gm.at[i, :length, :length].set(1.0)
        idx += length

    Wq, Wk, Wv = params["glob"]["Wqkv"]
    bq, bk, bv = params["glob"]["bqkv"]
    q = gi @ Wq + bq
    k = gi @ Wk + bk
    v = gi @ Wv + bv
    scores = (q / math.sqrt(H)) @ jnp.swapaxes(k, -1, -2)
    scores = scores + (1.0 - gm) * MASK_NEG
    probs = jax.nn.softmax(scores, axis=-1)
    ctx = probs @ v
    return ctx[:, 0, :]


def init_params(key, hidden_size, depth=3):
    Hh = hidden_size // 2
    keys = jax.random.split(key, 6)
    sub = {
        "W": 0.1 * jax.random.normal(keys[0], (depth, hidden_size, Hh), jnp.float32),
        "b": 0.05 * jax.random.normal(keys[1], (depth, Hh), jnp.float32),
        "gamma": jnp.ones((depth, Hh), jnp.float32),
        "beta": jnp.zeros((depth, Hh), jnp.float32),
    }
    glob = {
        "Wqkv": 0.1 * jax.random.normal(keys[2], (3, hidden_size, hidden_size), jnp.float32),
        "bqkv": 0.05 * jax.random.normal(keys[3], (3, hidden_size), jnp.float32),
    }
    return {"sub": sub, "glob": glob}


if __name__ == "__main__":
    key = jax.random.PRNGKey(0)
    H = 64          # hidden_size (model default is 128; small for the demo)
    V = 8           # max vectors per polyline
    P = 6           # total polylines across the global batch
    poly_num = [2, 4]          # static per-sample polyline counts (sum == P)

    k_poly, k_param = jax.random.split(key)
    polylines = jax.random.normal(k_poly, (P, V, H), jnp.float32)

    # SubGraph mask: 0.0 for valid vectors, -10000.0 for padded vectors.
    valid_counts = jnp.array([3 + (p % (V - 3)) for p in range(P)])
    vec_idx = jnp.arange(V)[None, :]
    attention_mask = jnp.where(vec_idx < valid_counts[:, None], 0.0, -10000.0)
    attention_mask = attention_mask[:, :, None].astype(jnp.float32)      # (P, V, 1)

    # Decoder inputs (unused: TNTDecoder source not provided).
    tar_candidate = jnp.zeros((len(poly_num), 16, 2), jnp.float32)
    tar_candidate_mask = jnp.ones((len(poly_num), 16), jnp.float32)

    params = init_params(k_param, H)

    out = vectornet_forward(params, polylines, poly_num, attention_mask,
                            tar_candidate, tar_candidate_mask)
    out = jax.block_until_ready(out)

    ref = reference_forward(params, polylines, poly_num, attention_mask)
    assert out.shape == (len(poly_num), H)
    # bf16 MXU operands (f32 accumulation / LN / softmax stats) -> tolerance
    # loosened from 1e-4 to 3e-2 per the perf review.
    assert jnp.allclose(out, ref, atol=3e-2, rtol=3e-2), "mismatch vs reference"

    print("KERNEL_OK")
</pallas_src>

<mosaic_0001>
module attributes {stable_mosaic.version = 11 : i64} {
  func.func @subgraph_kernel(%arg0: i32, %arg1: memref<8x8x64xf32, #tpu.memory_space<vmem>>, %arg2: memref<8x8x1xf32, #tpu.memory_space<vmem>>, %arg3: memref<3x64x32xbf16, #tpu.memory_space<vmem>>, %arg4: memref<3x32xf32, #tpu.memory_space<vmem>>, %arg5: memref<3x32xf32, #tpu.memory_space<vmem>>, %arg6: memref<3x32xf32, #tpu.memory_space<vmem>>, %arg7: memref<8x64xf32, #tpu.memory_space<vmem>>) attributes {dimension_semantics = [#tpu.dimension_semantics<parallel>], iteration_bounds = array<i64: 1>, scalar_prefetch = 0 : i64, scratch_operands = 0 : i64, tpu.core_type = #tpu.core_type<tc>, window_params = [{transform_indices = @transform_0, window_bounds = array<i64: 8, 8, 64>}, {transform_indices = @transform_1, window_bounds = array<i64: 8, 8, 1>}, {pipeline_mode = #tpu.pipeline_mode<synchronous>, transform_indices = @transform_2, window_bounds = array<i64: 3, 64, 32>}, {pipeline_mode = #tpu.pipeline_mode<synchronous>, transform_indices = @transform_3, window_bounds = array<i64: 3, 32>}, {pipeline_mode = #tpu.pipeline_mode<synchronous>, transform_indices = @transform_4, window_bounds = array<i64: 3, 32>}, {pipeline_mode = #tpu.pipeline_mode<synchronous>, transform_indices = @transform_5, window_bounds = array<i64: 3, 32>}, {transform_indices = @transform_6, window_bounds = array<i64: 8, 64>}]} {
    %c0 = arith.constant 0 : index
    %c0_0 = arith.constant 0 : index
    %c0_1 = arith.constant 0 : index
    %0 = vector.load %arg1[%c0, %c0_0, %c0_1] : memref<8x8x64xf32, #tpu.memory_space<vmem>>, vector<8x8x64xf32>
    %1 = vector.shape_cast %0 : vector<8x8x64xf32> to vector<64x64xf32>
    %c0_2 = arith.constant 0 : index
    %c0_3 = arith.constant 0 : index
    %c0_4 = arith.constant 0 : index
    %2 = vector.load %arg2[%c0_2, %c0_3, %c0_4] : memref<8x8x1xf32, #tpu.memory_space<vmem>>, vector<8x8x1xf32>
    %c0_5 = arith.constant 0 : index
    %c0_6 = arith.constant 0 : index
    %3 = vector.load %arg4[%c0_5, %c0_6] : memref<3x32xf32, #tpu.memory_space<vmem>>, vector<3x32xf32>
    %c0_7 = arith.constant 0 : index
    %c0_8 = arith.constant 0 : index
    %4 = vector.load %arg5[%c0_7, %c0_8] : memref<3x32xf32, #tpu.memory_space<vmem>>, vector<3x32xf32>
    %c0_9 = arith.constant 0 : index
    %c0_10 = arith.constant 0 : index
    %5 = vector.load %arg6[%c0_9, %c0_10] : memref<3x32xf32, #tpu.memory_space<vmem>>, vector<3x32xf32>
    %6 = tpu.iota {dimensions = array<i32: 0>} : vector<64x2xi32>
    %7 = tpu.iota {dimensions = array<i32: 1>} : vector<64x2xi32>
    %c32_i32 = arith.constant 32 : i32
    %8 = vector.broadcast %c32_i32 : i32 to vector<64x2xi32>
    %9 = arith.cmpi slt, %6, %8 : vector<64x2xi32>
    %10 = arith.extui %9 : vector<64x2xi1> to vector<64x2xi32>
    %11 = arith.sitofp %10 : vector<64x2xi32> to vector<64x2xf32>
    %c0_i32 = arith.constant 0 : i32
    %12 = vector.broadcast %c0_i32 : i32 to vector<64x2xi32>
    %13 = arith.cmpi eq, %7, %12 : vector<64x2xi32>
    %14 = arith.extui %13 : vector<64x2xi1> to vector<64x2xi32>
    %15 = arith.sitofp %14 : vector<64x2xi32> to vector<64x2xf32>
    %16 = arith.mulf %11, %15 : vector<64x2xf32>
    %cst = arith.constant 1.000000e+00 : f32
    %17 = vector.broadcast %cst : f32 to vector<64x2xf32>
    %18 = arith.subf %17, %11 : vector<64x2xf32>
    %cst_11 = arith.constant 1.000000e+00 : f32
    %19 = vector.broadcast %cst_11 : f32 to vector<64x2xf32>
    %20 = arith.subf %19, %15 : vector<64x2xf32>
    %21 = arith.mulf %18, %20 : vector<64x2xf32>
    %22 = arith.addf %16, %21 : vector<64x2xf32>
    %23 = arith.truncf %1 : vector<64x64xf32> to vector<64x64xbf16>
    %c0_12 = arith.constant 0 : index
    %c0_13 = arith.constant 0 : index
    %c0_14 = arith.constant 0 : index
    %24 = vector.load %arg3[%c0_12, %c0_13, %c0_14] : memref<3x64x32xbf16, #tpu.memory_space<vmem>>, vector<1x64x32xbf16>
    %25 = vector.shape_cast %24 : vector<1x64x32xbf16> to vector<64x32xbf16>
    %cst_15 = arith.constant dense<0.000000e+00> : vector<64x32xf32>
    %26 = tpu.matmul %23, %25, %cst_15 {dimension_numbers = #tpu.dot_dimension_numbers<[1], [0], [0], [1], [0, 0, 1, 1], [], []>} : vector<64x64xbf16>, vector<64x32xbf16>, vector<64x32xf32> -> vector<64x32xf32>
    %27 = vector.extract_strided_slice %3 {offsets = [0, 0], sizes = [1, 32], strides = [1, 1]} : vector<3x32xf32> to vector<1x32xf32>
    %28 = vector.broadcast %27 : vector<1x32xf32> to vector<64x32xf32>
    %29 = arith.addf %26, %28 : vector<64x32xf32>
    %30 = arith.mulf %29, %29 : vector<64x32xf32>
    %31 = tpu.concatenate %29, %30 in 1 : vector<64x32xf32>, vector<64x32xf32> -> vector<64x64xf32>
    %cst_16 = arith.constant dense<0.000000e+00> : vector<64x2xf32>
    %32 = tpu.matmul %31, %22, %cst_16 {dimension_numbers = #tpu.dot_dimension_numbers<[1], [0], [0], [1], [0, 0, 1, 1], [], []>} : vector<64x64xf32>, vector<64x2xf32>, vector<64x2xf32> -> vector<64x2xf32>
    %cst_17 = arith.constant 3.125000e-02 : f32
    %33 = vector.broadcast %cst_17 : f32 to vector<64x2xf32>
    %34 = arith.mulf %32, %33 : vector<64x2xf32>
    %35 = vector.extract_strided_slice %34 {offsets = [0, 0], sizes = [64, 1], strides = [1, 1]} : vector<64x2xf32> to vector<64x1xf32>
    %36 = vector.extract_strided_slice %34 {offsets = [0, 1], sizes = [64, 1], strides = [1, 1]} : vector<64x2xf32> to vector<64x1xf32>
    %37 = arith.mulf %35, %35 : vector<64x1xf32>
    %38 = arith.subf %36, %37 : vector<64x1xf32>
    %39 = vector.broadcast %35 : vector<64x1xf32> to vector<64x32xf32>
    %40 = arith.subf %29, %39 : vector<64x32xf32>
    %cst_18 = arith.constant 9.99999974E-6 : f32
    %41 = vector.broadcast %cst_18 : f32 to vector<64x1xf32>
    %42 = arith.addf %38, %41 : vector<64x1xf32>
    %43 = math.rsqrt %42 : vector<64x1xf32>
    %44 = vector.broadcast %43 : vector<64x1xf32> to vector<64x32xf32>
    %45 = arith.mulf %40, %44 : vector<64x32xf32>
    %46 = vector.extract_strided_slice %4 {offsets = [0, 0], sizes = [1, 32], strides = [1, 1]} : vector<3x32xf32> to vector<1x32xf32>
    %47 = vector.broadcast %46 : vector<1x32xf32> to vector<64x32xf32>
    %48 = arith.mulf %45, %47 : vector<64x32xf32>
    %49 = vector.extract_strided_slice %5 {offsets = [0, 0], sizes = [1, 32], strides = [1, 1]} : vector<3x32xf32> to vector<1x32xf32>
    %50 = vector.broadcast %49 : vector<1x32xf32> to vector<64x32xf32>
    %51 = arith.addf %48, %50 : vector<64x32xf32>
    %cst_19 = arith.constant 0.000000e+00 : f32
    %52 = vector.broadcast %cst_19 : f32 to vector<64x32xf32>
    %53 = arith.maximumf %51, %52 : vector<64x32xf32>
    %54 = vector.shape_cast %53 : vector<64x32xf32> to vector<8x8x32xf32>
    %55 = vector.broadcast %2 : vector<8x8x1xf32> to vector<8x8x32xf32>
    %56 = arith.addf %54, %55 : vector<8x8x32xf32>
    %cst_20 = arith.constant dense<0xFF800000> : vector<8x32xf32>
    %57 = vector.multi_reduction <maximumf>, %56, %cst_20 [1] : vector<8x8x32xf32> to vector<8x32xf32>
    %cst_21 = arith.constant 0.000000e+00 : f32
    %58 = vector.broadcast %cst_21 : f32 to vector<8x32xf32>
    %59 = arith.maximumf %57, %58 : vector<8x32xf32>
    %c1 = arith.constant 1 : index
    %c0_22 = arith.constant 0 : index
    %c0_23 = arith.constant 0 : index
    %60 = vector.load %arg3[%c1, %c0_22, %c0_23] : memref<3x64x32xbf16, #tpu.memory_space<vmem>>, vector<1x64x32xbf16>
    %61 = vector.shape_cast %60 : vector<1x64x32xbf16> to vector<64x32xbf16>
    %62 = arith.truncf %53 : vector<64x32xf32> to vector<64x32xbf16>
    %63 = vector.extract_strided_slice %61 {offsets = [0, 0], sizes = [32, 32], strides = [1, 1]} : vector<64x32xbf16> to vector<32x32xbf16>
    %cst_24 = arith.constant dense<0.000000e+00> : vector<64x32xf32>
    %64 = tpu.matmul %62, %63, %cst_24 {dimension_numbers = #tpu.dot_dimension_numbers<[1], [0], [0], [1], [0, 0, 1, 1], [], []>} : vector<64x32xbf16>, vector<32x32xbf16>, vector<64x32xf32> -> vector<64x32xf32>
    %65 = arith.truncf %59 : vector<8x32xf32> to vector<8x32xbf16>
    %66 = vector.extract_strided_slice %61 {offsets = [32, 0], sizes = [32, 32], strides = [1, 1]} : vector<64x32xbf16> to vector<32x32xbf16>
    %cst_25 = arith.constant dense<0.000000e+00> : vector<8x32xf32>
    %67 = tpu.matmul %65, %66, %cst_25 {dimension_numbers = #tpu.dot_dimension_numbers<[1], [0], [0], [1], [0, 0, 1, 1], [], []>} : vector<8x32xbf16>, vector<32x32xbf16>, vector<8x32xf32> -> vector<8x32xf32>
    %68 = vector.shape_cast %64 : vector<64x32xf32> to vector<8x8x32xf32>
    %69 = vector.shape_cast %67 : vector<8x32xf32> to vector<8x1x32xf32>
    %70 = vector.broadcast %69 : vector<8x1x32xf32> to vector<8x8x32xf32>
    %71 = arith.addf %68, %70 : vector<8x8x32xf32>
    %72 = vector.shape_cast %71 : vector<8x8x32xf32> to vector<64x32xf32>
    %73 = vector.extract_strided_slice %3 {offsets = [1, 0], sizes = [1, 32], strides = [1, 1]} : vector<3x32xf32> to vector<1x32xf32>
    %74 = vector.broadcast %73 : vector<1x32xf32> to vector<64x32xf32>
    %75 = arith.addf %72, %74 : vector<64x32xf32>
    %76 = arith.mulf %75, %75 : vector<64x32xf32>
    %77 = tpu.concatenate %75, %76 in 1 : vector<64x32xf32>, vector<64x32xf32> -> vector<64x64xf32>
    %cst_26 = arith.constant dense<0.000000e+00> : vector<64x2xf32>
    %78 = tpu.matmul %77, %22, %cst_26 {dimension_numbers = #tpu.dot_dimension_numbers<[1], [0], [0], [1], [0, 0, 1, 1], [], []>} : vector<64x64xf32>, vector<64x2xf32>, vector<64x2xf32> -> vector<64x2xf32>
    %cst_27 = arith.constant 3.125000e-02 : f32
    %79 = vector.broadcast %cst_27 : f32 to vector<64x2xf32>
    %80 = arith.mulf %78, %79 : vector<64x2xf32>
    %81 = vector.extract_strided_slice %80 {offsets = [0, 0], sizes = [64, 1], strides = [1, 1]} : vector<64x2xf32> to vector<64x1xf32>
    %82 = vector.extract_strided_slice %80 {offsets = [0, 1], sizes = [64, 1], strides = [1, 1]} : vector<64x2xf32> to vector<64x1xf32>
    %83 = arith.mulf %81, %81 : vector<64x1xf32>
    %84 = arith.subf %82, %83 : vector<64x1xf32>
    %85 = vector.broadcast %81 : vector<64x1xf32> to vector<64x32xf32>
    %86 = arith.subf %75, %85 : vector<64x32xf32>
    %cst_28 = arith.constant 9.99999974E-6 : f32
    %87 = vector.broadcast %cst_28 : f32 to vector<64x1xf32>
    %88 = arith.addf %84, %87 : vector<64x1xf32>
    %89 = math.rsqrt %88 : vector<64x1xf32>
    %90 = vector.broadcast %89 : vector<64x1xf32> to vector<64x32xf32>
    %91 = arith.mulf %86, %90 : vector<64x32xf32>
    %92 = vector.extract_strided_slice %4 {offsets = [1, 0], sizes = [1, 32], strides = [1, 1]} : vector<3x32xf32> to vector<1x32xf32>
    %93 = vector.broadcast %92 : vector<1x32xf32> to vector<64x32xf32>
    %94 = arith.mulf %91, %93 : vector<64x32xf32>
    %95 = vector.extract_strided_slice %5 {offsets = [1, 0], sizes = [1, 32], strides = [1, 1]} : vector<3x32xf32> to vector<1x32xf32>
    %96 = vector.broadcast %95 : vector<1x32xf32> to vector<64x32xf32>
    %97 = arith.addf %94, %96 : vector<64x32xf32>
    %cst_29 = arith.constant 0.000000e+00 : f32
    %98 = vector.broadcast %cst_29 : f32 to vector<64x32xf32>
    %99 = arith.maximumf %97, %98 : vector<64x32xf32>
    %100 = vector.shape_cast %99 : vector<64x32xf32> to vector<8x8x32xf32>
    %101 = vector.broadcast %2 : vector<8x8x1xf32> to vector<8x8x32xf32>
    %102 = arith.addf %100, %101 : vector<8x8x32xf32>
    %cst_30 = arith.constant dense<0xFF800000> : vector<8x32xf32>
    %103 = vector.multi_reduction <maximumf>, %102, %cst_30 [1] : vector<8x8x32xf32> to vector<8x32xf32>
    %cst_31 = arith.constant 0.000000e+00 : f32
    %104 = vector.broadcast %cst_31 : f32 to vector<8x32xf32>
    %105 = arith.maximumf %103, %104 : vector<8x32xf32>
    %c2 = arith.constant 2 : index
    %c0_32 = arith.constant 0 : index
    %c0_33 = arith.constant 0 : index
    %106 = vector.load %arg3[%c2, %c0_32, %c0_33] : memref<3x64x32xbf16, #tpu.memory_space<vmem>>, vector<1x64x32xbf16>
    %107 = vector.shape_cast %106 : vector<1x64x32xbf16> to vector<64x32xbf16>
    %108 = arith.truncf %99 : vector<64x32xf32> to vector<64x32xbf16>
    %109 = vector.extract_strided_slice %107 {offsets = [0, 0], sizes = [32, 32], strides = [1, 1]} : vector<64x32xbf16> to vector<32x32xbf16>
    %cst_34 = arith.constant dense<0.000000e+00> : vector<64x32xf32>
    %110 = tpu.matmul %108, %109, %cst_34 {dimension_numbers = #tpu.dot_dimension_numbers<[1], [0], [0], [1], [0, 0, 1, 1], [], []>} : vector<64x32xbf16>, vector<32x32xbf16>, vector<64x32xf32> -> vector<64x32xf32>
    %111 = arith.truncf %105 : vector<8x32xf32> to vector<8x32xbf16>
    %112 = vector.extract_strided_slice %107 {offsets = [32, 0], sizes = [32, 32], strides = [1, 1]} : vector<64x32xbf16> to vector<32x32xbf16>
    %cst_35 = arith.constant dense<0.000000e+00> : vector<8x32xf32>
    %113 = tpu.matmul %111, %112, %cst_35 {dimension_numbers = #tpu.dot_dimension_numbers<[1], [0], [0], [1], [0, 0, 1, 1], [], []>} : vector<8x32xbf16>, vector<32x32xbf16>, vector<8x32xf32> -> vector<8x32xf32>
    %114 = vector.shape_cast %110 : vector<64x32xf32> to vector<8x8x32xf32>
    %115 = vector.shape_cast %113 : vector<8x32xf32> to vector<8x1x32xf32>
    %116 = vector.broadcast %115 : vector<8x1x32xf32> to vector<8x8x32xf32>
    %117 = arith.addf %114, %116 : vector<8x8x32xf32>
    %118 = vector.shape_cast %117 : vector<8x8x32xf32> to vector<64x32xf32>
    %119 = vector.extract_strided_slice %3 {offsets = [2, 0], sizes = [1, 32], strides = [1, 1]} : vector<3x32xf32> to vector<1x32xf32>
    %120 = vector.broadcast %119 : vector<1x32xf32> to vector<64x32xf32>
    %121 = arith.addf %118, %120 : vector<64x32xf32>
    %122 = arith.mulf %121, %121 : vector<64x32xf32>
    %123 = tpu.concatenate %121, %122 in 1 : vector<64x32xf32>, vector<64x32xf32> -> vector<64x64xf32>
    %cst_36 = arith.constant dense<0.000000e+00> : vector<64x2xf32>
    %124 = tpu.matmul %123, %22, %cst_36 {dimension_numbers = #tpu.dot_dimension_numbers<[1], [0], [0], [1], [0, 0, 1, 1], [], []>} : vector<64x64xf32>, vector<64x2xf32>, vector<64x2xf32> -> vector<64x2xf32>
    %cst_37 = arith.constant 3.125000e-02 : f32
    %125 = vector.broadcast %cst_37 : f32 to vector<64x2xf32>
    %126 = arith.mulf %124, %125 : vector<64x2xf32>
    %127 = vector.extract_strided_slice %126 {offsets = [0, 0], sizes = [64, 1], strides = [1, 1]} : vector<64x2xf32> to vector<64x1xf32>
    %128 = vector.extract_strided_slice %126 {offsets = [0, 1], sizes = [64, 1], strides = [1, 1]} : vector<64x2xf32> to vector<64x1xf32>
    %129 = arith.mulf %127, %127 : vector<64x1xf32>
    %130 = arith.subf %128, %129 : vector<64x1xf32>
    %131 = vector.broadcast %127 : vector<64x1xf32> to vector<64x32xf32>
    %132 = arith.subf %121, %131 : vector<64x32xf32>
    %cst_38 = arith.constant 9.99999974E-6 : f32
    %133 = vector.broadcast %cst_38 : f32 to vector<64x1xf32>
    %134 = arith.addf %130, %133 : vector<64x1xf32>
    %135 = math.rsqrt %134 : vector<64x1xf32>
    %136 = vector.broadcast %135 : vector<64x1xf32> to vector<64x32xf32>
    %137 = arith.mulf %132, %136 : vector<64x32xf32>
    %138 = vector.extract_strided_slice %4 {offsets = [2, 0], sizes = [1, 32], strides = [1, 1]} : vector<3x32xf32> to vector<1x32xf32>
    %139 = vector.broadcast %138 : vector<1x32xf32> to vector<64x32xf32>
    %140 = arith.mulf %137, %139 : vector<64x32xf32>
    %141 = vector.extract_strided_slice %5 {offsets = [2, 0], sizes = [1, 32], strides = [1, 1]} : vector<3x32xf32> to vector<1x32xf32>
    %142 = vector.broadcast %141 : vector<1x32xf32> to vector<64x32xf32>
    %143 = arith.addf %140, %142 : vector<64x32xf32>
    %cst_39 = arith.constant 0.000000e+00 : f32
    %144 = vector.broadcast %cst_39 : f32 to vector<64x32xf32>
    %145 = arith.maximumf %143, %144 : vector<64x32xf32>
    %146 = vector.shape_cast %145 : vector<64x32xf32> to vector<8x8x32xf32>
    %147 = vector.broadcast %2 : vector<8x8x1xf32> to vector<8x8x32xf32>
    %148 = arith.addf %146, %147 : vector<8x8x32xf32>
    %cst_40 = arith.constant dense<0xFF800000> : vector<8x32xf32>
    %149 = vector.multi_reduction <maximumf>, %148, %cst_40 [1] : vector<8x8x32xf32> to vector<8x32xf32>
    %cst_41 = arith.constant 0.000000e+00 : f32
    %150 = vector.broadcast %cst_41 : f32 to vector<8x32xf32>
    %151 = arith.maximumf %149, %150 : vector<8x32xf32>
    %cst_42 = arith.constant dense<0xFF800000> : vector<8x32xf32>
    %152 = vector.multi_reduction <maximumf>, %146, %cst_42 [1] : vector<8x8x32xf32> to vector<8x32xf32>
    %153 = tpu.concatenate %152, %151 in 1 : vector<8x32xf32>, vector<8x32xf32> -> vector<8x64xf32>
    %c0_43 = arith.constant 0 : index
    %c0_44 = arith.constant 0 : index
    %154 = vector.load %arg7[%c0_43, %c0_44] : memref<8x64xf32, #tpu.memory_space<vmem>>, vector<8x64xf32>
    tpu.vector_store %arg7[%c0_43, %c0_44], %153 {strides = array<i32>} : memref<8x64xf32, #tpu.memory_space<vmem>>, vector<8x64xf32>,
    return
  }
  func.func @transform_0(%arg0: i32) -> (i32, i32, i32) {
    %c0_i32 = arith.constant 0 : i32
    %c0_i32_0 = arith.constant 0 : i32
    %c0_i32_1 = arith.constant 0 : i32
    return %arg0, %c0_i32, %c0_i32_0 : i32, i32, i32
  }
  func.func @transform_1(%arg0: i32) -> (i32, i32, i32) {
    %c0_i32 = arith.constant 0 : i32
    %c0_i32_0 = arith.constant 0 : i32
    %c0_i32_1 = arith.constant 0 : i32
    return %arg0, %c0_i32, %c0_i32_0 : i32, i32, i32
  }
  func.func @transform_2(%arg0: i32) -> (i32, i32, i32) {
    %c0_i32 = arith.constant 0 : i32
    %c0_i32_0 = arith.constant 0 : i32
    %c0_i32_1 = arith.constant 0 : i32
    %c0_i32_2 = arith.constant 0 : i32
    return %c0_i32, %c0_i32_0, %c0_i32_1 : i32, i32, i32
  }
  func.func @transform_3(%arg0: i32) -> (i32, i32) {
    %c0_i32 = arith.constant 0 : i32
    %c0_i32_0 = arith.constant 0 : i32
    %c0_i32_1 = arith.constant 0 : i32
    return %c0_i32, %c0_i32_0 : i32, i32
  }
  func.func @transform_4(%arg0: i32) -> (i32, i32) {
    %c0_i32 = arith.constant 0 : i32
    %c0_i32_0 = arith.constant 0 : i32
    %c0_i32_1 = arith.constant 0 : i32
    return %c0_i32, %c0_i32_0 : i32, i32
  }
  func.func @transform_5(%arg0: i32) -> (i32, i32) {
    %c0_i32 = arith.constant 0 : i32
    %c0_i32_0 = arith.constant 0 : i32
    %c0_i32_1 = arith.constant 0 : i32
    return %c0_i32, %c0_i32_0 : i32, i32
  }
  func.func @transform_6(%arg0: i32) -> (i32, i32) {
    %c0_i32 = arith.constant 0 : i32
    %c0_i32_0 = arith.constant 0 : i32
    return %arg0, %c0_i32 : i32, i32
  }
}

</mosaic_0001>

<bundles_post_ra>
// kernel: tpu_custom_call.1
= control target key start
LH: loop header
LB: loop body
LE: loop exit
PB: predicated region body
PF: predicated region fallthrough
CT: control target
= control target key end

     0   :  { %s3010_s0 = inlined_call_operand.vmem [shape: f32[8,8,64], index: 0, kind: input, shape index: {}]   ;;  %s3011_s1 = inlined_call_operand.vmem [shape: f32[8,8,1], index: 1, kind: input, shape index: {}]   ;;  %s3012_s2 = inlined_call_operand.vmem [shape: bf16[3,64,32], index: 2, kind: input, shape index: {}]   ;;  %s3013_s3 = inlined_call_operand.vmem [shape: f32[3,32], index: 3, kind: input, shape index: {}]   ;;  %s3014_s4 = inlined_call_operand.vmem [shape: f32[3,32], index: 4, kind: input, shape index: {}]   ;;  %s3015_s5 = inlined_call_operand.vmem [shape: f32[3,32], index: 5, kind: input, shape index: {}]   ;;  %s3016_s6 = inlined_call_operand.hbm [shape: f32[8,64], index: 6, kind: output, shape index: {}]  }
   0x1   :  { %v2143_v0 = vld [vmem:[%s3012_s2 + $0x18] sm:$0xff]  ;;  %v2142_v1 = vld [vmem:[%s3012_s2 + $0x10] sm:$0xff] }
   0x2   :  { %169 = vmatpush.bf16.msra.mxu0 %v2143_v0 }
   0x3   :  { %11 = vsyncpa [#allocation3], 0  ;;  %v2141_v2 = vld [vmem:[%s3012_s2 + $0x8] sm:$0xff]  ;;  %v2140_v3 = vld [vmem:[%s3012_s2] sm:$0xff]  ;;  %vm3017_vm0 = vcmask 523264   ;;  %s2263_s23 = smov 32   ;;  %v53_v26 = vlaneseq }
   0x4   :  { %v25_v4 = vld [vmem:[%s3010_s0] sm:$0xff]  ;;  %v26_v5 = vld [vmem:[%s3010_s0 + $0x8] sm:$0xff]  ;;  %v27_v7 = vld [vmem:[%s3010_s0 + $0x10] sm:$0xff]  ;;  %v2264_v29 = vmov 0.0   ;;  %vm234_vm2 = vcmask 261120   ;;  %s2028_s17 = sshll.u32 %s3016_s6, 4  ;;  %s2029_s17 = int_to_ptr.hbm [resolvable:$true] %s2028_s17 }
   0x5   :  { %v115_v6 = vpack.c.bf16 %v26_v5, %v25_v4  ;;  %v28_v8 = vld [vmem:[%s3010_s0 + $0x18] sm:$0xff]  ;;  %v29_v10 = vld [vmem:[%s3010_s0 + $0x20] sm:$0xff]  ;;  %v30_v11 = vld [vmem:[%s3010_s0 + $0x28] sm:$0xff]  ;;  %v54_v28 = vand.u32 127, %v53_v26 }
   0x6   :  { %170 = vmatpush.bf16.msra.mxu0 %v2142_v1  ;;  %v116_v9 = vpack.c.bf16 %v28_v8, %v27_v7  ;;  %v117_v12 = vpack.c.bf16 %v30_v11, %v29_v10  ;;  %v31_v13 = vld [vmem:[%s3010_s0 + $0x30] sm:$0xff]  ;;  %v32_v14 = vld [vmem:[%s3010_s0 + $0x38] sm:$0xff]  ;;  %v2347_v16 = vld [vmem:[%s3013_s3] sm:$0x7]  ;;  %s2265_s0 = smov 1  }
   0x7   :  { %v118_v15 = vpack.c.bf16 %v32_v14, %v31_v13  ;;  %v127_v17 = vperm.slane %v2347_v16, 0  ;;  %vm79_vm1 = vcmp.eq.s32.totalorder %v54_v28, 0 }
   0x8   :  { %v2037_v30 = vsel %vm79_vm1, 1.0, %v2264_v29 }
   0x9   :  { %v86_v31 = vmul.f32 0.0, %v2037_v30  ;;  %v98_v32 = vsub.f32 1.0, %v2037_v30 }
   0xa   :  { %171 = vmatpush.bf16.msra.mxu0 %v2141_v2 }
   0xb   :  { %v2360_v33 = vadd.f32 %v98_v32, %v86_v31  ;;  %v99_v35 = vmul.f32 0.0, %v98_v32  ;;  %v33_v31 = vld [vmem:[%s3011_s1] sm:$0xff] }
   0xd   :  { %275 = vmatpush.msra.mxu1 %v2360_v33  ;;  %2152 = vmatpush.msra.mxu3 %v2360_v33  ;;  %v2371_v38 = vadd.f32 %v2037_v30, %v99_v35 }
   0xe   :  { %172 = vmatpush.bf16.msra.mxu0 %v2140_v3 }
   0xf   :  { %276 = vmatpush.msra.mxu1 %v2360_v33  ;;  %2153 = vmatpush.msra.mxu3 %v2360_v33 }
  0x11   :  { %2054 = vmatmul.msk.bf16.vlgmr.msra.gmra.mxu0 %vm3017_vm0, %v115_v6  ;;  %277 = vmatpush.msra.mxu1 %v2360_v33 }
  0x12   :  { %2154 = vmatpush.msra.mxu3 %v2360_v33 }
  0x13   :  { %278 = vmatpush.msra.mxu1 %v2360_v33 }
  0x14   :  { %2155 = vmatpush.msra.mxu3 %v2360_v33 }
  0x15   :  { %279 = vmatpush.msra.mxu1 %v2371_v38 }
  0x16   :  { %2156 = vmatpush.msra.mxu3 %v2371_v38 }
  0x17   :  { %280 = vmatpush.msra.mxu1 %v2371_v38 }
  0x18   :  { %2157 = vmatpush.msra.mxu3 %v2371_v38 }
  0x19   :  { %281 = vmatpush.msra.mxu1 %v2371_v38 }
  0x1a   :  { %2158 = vmatpush.msra.mxu3 %v2371_v38 }
  0x1b   :  { %282 = vmatpush.msra.mxu1 %v2371_v38 }
  0x1c   :  { %2159 = vmatpush.msra.mxu3 %v2371_v38 }
  0x1d   :  { %1558 = vmatpush.msrb.mxu1 %v2360_v33 }
  0x1f   :  { %1559 = vmatpush.msrb.mxu1 %v2360_v33 }
  0x21   :  { %2055 = vmatmul.msk.bf16.gmra.mxu0 %vm3017_vm0, %v116_v9  ;;  %1560 = vmatpush.msrb.mxu1 %v2360_v33  ;;  %v2266_v9 = vmov 0  }
  0x22   :  { %2168 = vset.pattern.permute.xlu1 %v2266_v9  ;;  %2169 = vset.pattern.permute.xlu2 %v2266_v9 }
  0x23   :  { %1561 = vmatpush.msrb.mxu1 %v2360_v33  ;;  %2170 = vset.pattern.permute.xlu0 %v2266_v9 }
  0x25   :  { %1562 = vmatpush.msrb.mxu1 %v2371_v38 }
  0x27   :  { %1563 = vmatpush.msrb.mxu1 %v2371_v38 }
  0x29   :  { %1564 = vmatpush.msrb.mxu1 %v2371_v38 }
  0x2b   :  { %1565 = vmatpush.msrb.mxu1 %v2371_v38 }
  0x31   :  { %2056 = vmatmul.msk.bf16.gmra.mxu0 %vm3017_vm0, %v117_v12 }
  0x41   :  { %2057 = vmatmul.msk.bf16.gmra.mxu0 %vm3017_vm0, %v118_v15 }
  0x8e   :  { %v174_v18 = vpop.f32.mrf.mxu0 }
  0x8f   :  { %v2350_v19 = vadd.f32 %v174_v18, %v127_v17 }
  0x91   :  { %v194_v20 = vmul.f32 %v2350_v19, %v2350_v19 }
  0x93   :  { %210 = vrot.lane.b32.xlu0 %v194_v20, %s2263_s23 }
  0x96   :  { %v176_v21 = vpop.f32.mrf.mxu0 }
  0x97   :  { %v2355_v22 = vadd.f32 %v176_v21, %v127_v17 }
  0x99   :  { %v195_v23 = vmul.f32 %v2355_v22, %v2355_v22 }
  0x9b   :  { %212 = vrot.lane.b32.xlu0 %v195_v23, %s2263_s23 }
  0x9e   :  { %v179_v24 = vpop.f32.mrf.mxu0 }
  0x9f   :  { %v2377_v39 = vadd.f32 %v179_v24, %v127_v17 }
  0xa1   :  { %v196_v43 = vmul.f32 %v2377_v39, %v2377_v39 }
  0xa6   :  { %v181_v25 = vpop.f32.mrf.mxu0 }
  0xa7   :  { %v2395_v44 = vadd.f32 %v181_v25, %v127_v17 }
  0xa9   :  { %v197_v48 = vmul.f32 %v2395_v44, %v2395_v44 }
  0xae   :  { %v184_v27 = vpop.f32.mrf.mxu0 }
  0xaf   :  { %v2397_v45 = vadd.f32 %v184_v27, %v127_v17 }
  0xb1   :  { %v198_v49 = vmul.f32 %v2397_v45, %v2397_v45 }
  0xb6   :  { %v186_v34 = vpop.f32.mrf.mxu0 }
  0xb7   :  { %v2364_v36 = vadd.f32 %v186_v34, %v127_v17 }
  0xb9   :  { %v199_v37 = vmul.f32 %v2364_v36, %v2364_v36 }
  0xbb   :  { %220 = vrot.lane.b32.xlu1 %v199_v37, %s2263_s23  ;;  %v36_v37 = vld [vmem:[%s3011_s1 + $0x18] sm:$0xff] }
  0xbe   :  { %v189_v40 = vpop.f32.mrf.mxu0 }
  0xbf   :  { %v2381_v41 = vadd.f32 %v189_v40, %v127_v17 }
  0xc1   :  { %v200_v42 = vmul.f32 %v2381_v41, %v2381_v41 }
  0xc3   :  { %222 = vrot.lane.b32.xlu2 %v200_v42, %s2263_s23  ;;  %214 = vrot.lane.b32.xlu1 %v196_v43, %s2263_s23 }
  0xc6   :  { %v191_v46 = vpop.f32.mrf.mxu0 }
  0xc7   :  { %v2400_v47 = vadd.f32 %v191_v46, %v127_v17  ;;  %v2267_v46 = vmov 1  }
  0xc9   :  { %v201_v50 = vmul.f32 %v2400_v47, %v2400_v47 }
  0xcb   :  { %216 = vrot.lane.b32.xlu2 %v197_v48, %s2263_s23  ;;  %218 = vrot.lane.b32.xlu1 %v198_v49, %s2263_s23  ;;  %v35_v48 = vld [vmem:[%s3011_s1 + $0x10] sm:$0xff] }
  0xcc   :  { %224 = vrot.lane.b32.xlu0 %v201_v50, %s2263_s23 }
 0x105   :  { %v211_v51 = vpop.permute.xlu0 %210 }
 0x106   :  { %v235_v52 = vsel %vm234_vm2, %v2350_v19, %v211_v51 }
 0x107   :  { %2058 = vmatmul.msk.f32.vlgmr.msra.gmra.mxu1 %vm3017_vm0, %v235_v52 }
 0x10d   :  { %v213_v53 = vpop.permute.xlu0 %212 }
 0x10e   :  { %v236_v54 = vsel %vm234_vm2, %v2355_v22, %v213_v53  ;;  %v34_v53 = vld [vmem:[%s3011_s1 + $0x8] sm:$0xff] }
 0x10f   :  { %2059 = vmatmul.msk.f32.gmra.mxu1 %vm3017_vm0, %v236_v54 }
 0x11d   :  { %v223_v57 = vpop.permute.xlu2 %222 }
 0x11e   :  { %v241_v60 = vsel %vm234_vm2, %v2381_v41, %v223_v57 }
 0x125   :  { %v217_v61 = vpop.permute.xlu2 %216 }
 0x126   :  { %v238_v63 = vsel %vm234_vm2, %v2395_v44, %v217_v61 }
 0x12d   :  { %v221_v55 = vpop.permute.xlu1 %220 }
 0x12e   :  { %v240_v56 = vsel %vm234_vm2, %v2364_v36, %v221_v55 }
 0x12f   :  { %2063 = vmatmul.msk.f32.vlgmr.msra.gmra.mxu3 %vm3017_vm0, %v240_v56 }
 0x135   :  { %v215_v58 = vpop.permute.xlu1 %214 }
 0x136   :  { %v237_v59 = vsel %vm234_vm2, %v2377_v39, %v215_v58 }
 0x137   :  { %2060 = vmatmul.msk.f32.gmra.mxu1 %vm3017_vm0, %v237_v59  ;;  %2064 = vmatmul.msk.f32.gmra.mxu3 %vm3017_vm0, %v241_v60 }
 0x13d   :  { %v219_v1 = vpop.permute.xlu1 %218 }
 0x13e   :  { %v225_v62 = vpop.permute.xlu0 %224  ;;  %v239_v2 = vsel %vm234_vm2, %v2397_v45, %v219_v1 }
 0x13f   :  { %2061 = vmatmul.msk.f32.gmra.mxu1 %vm3017_vm0, %v238_v63  ;;  %v242_v0 = vsel %vm234_vm2, %v2400_v47, %v225_v62  ;;  %v37_v63 = vld [vmem:[%s3011_s1 + $0x20] sm:$0xff] }
 0x140   :  { %2065 = vmatmul.msk.f32.gmra.mxu3 %vm3017_vm0, %v242_v0 }
 0x147   :  { %2062 = vmatmul.msk.f32.gmra.mxu1 %vm3017_vm0, %v239_v2 }
 0x184   :  { %v284_v3 = vpop.f32.mrf.mxu1 }
 0x185   :  { %v308_v4 = vmul.f32 0.03125, %v284_v3 }
 0x187   :  { %v316_v5 = vmul.f32 %v308_v4, %v308_v4 }
 0x189   :  { %332 = vrot.lane.b32.xlu2 %v316_v5, %s2265_s0 }
 0x18c   :  { %v287_v6 = vpop.f32.mrf.mxu1 }
 0x18d   :  { %v2443_v7 = vmul.f32 0.03125, %v287_v6 }
 0x18f   :  { %v317_v8 = vmul.f32 %v2443_v7, %v2443_v7 }
 0x191   :  { %334 = vrot.lane.b32.xlu0 %v317_v8, %s2265_s0 }
 0x1b2   :  { %v299_v11 = vpop.f32.mrf.mxu3 }
 0x1b3   :  { %v2456_v14 = vmul.f32 0.03125, %v299_v11 }
 0x1b4   :  { %v290_v10 = vpop.f32.mrf.mxu1 }
 0x1b5   :  { %v2451_v12 = vmul.f32 0.03125, %v290_v10  ;;  %v321_v20 = vmul.f32 %v2456_v14, %v2456_v14 }
 0x1b7   :  { %v318_v13 = vmul.f32 %v2451_v12, %v2451_v12 }
 0x1b9   :  { %336 = vrot.lane.b32.xlu1 %v318_v13, %s2265_s0 }
 0x1ba   :  { %v302_v18 = vpop.f32.mrf.mxu3 }
 0x1bb   :  { %v2466_v23 = vmul.f32 0.03125, %v302_v18 }
 0x1bc   :  { %v293_v15 = vpop.f32.mrf.mxu1 }
 0x1bd   :  { %v2458_v17 = vmul.f32 0.03125, %v293_v15  ;;  %v322_v26 = vmul.f32 %v2466_v23, %v2466_v23 }
 0x1bf   :  { %v319_v21 = vmul.f32 %v2458_v17, %v2458_v17 }
 0x1c1   :  { %342 = vrot.lane.b32.xlu1 %v321_v20, %s2265_s0  ;;  %338 = vrot.lane.b32.xlu2 %v319_v21, %s2265_s0 }
 0x1c3   :  { %v305_v28 = vpop.f32.mrf.mxu3 }
 0x1c4   :  { %v296_v24 = vpop.f32.mrf.mxu1  ;;  %v2476_v29 = vmul.f32 0.03125, %v305_v28 }
 0x1c5   :  { %v2468_v25 = vmul.f32 0.03125, %v296_v24 }
 0x1c6   :  { %v323_v30 = vmul.f32 %v2476_v29, %v2476_v29 }
 0x1c7   :  { %v320_v27 = vmul.f32 %v2468_v25, %v2468_v25 }
 0x1c9   :  { %366 = vperm.xlu1 %2168, %v308_v4   ;;  %344 = vrot.lane.b32.xlu2 %v322_v26, %s2265_s0 }
 0x1ca   :  { %340 = vrot.lane.b32.xlu0 %v320_v27, %s2265_s0 }
 0x1d1   :  { %381 = vperm.xlu1 %2168, %v2458_v17   ;;  %371 = vperm.xlu2 %2169, %v2443_v7  }
 0x1d2   :  { %346 = vrot.lane.b32.xlu0 %v323_v30, %s2265_s0 }
 0x1d9   :  { %391 = vperm.xlu1 %2168, %v2456_v14   ;;  %386 = vperm.xlu2 %2169, %v2468_v25  }
 0x1da   :  { %376 = vperm.xlu0 %2170, %v2451_v12  }
 0x1e1   :  { %396 = vperm.xlu1 %2168, %v2466_v23   ;;  %576 = vperm.xlu2 %2169, %v33_v31  }
 0x1e2   :  { %401 = vperm.xlu0 %2170, %v2476_v29  }
 0x1e3   :  { %v333_v32 = vpop.permute.xlu2 %332 }
 0x1e4   :  { %v356_v34 = vsub.f32 %v308_v4, %v333_v32 }
 0x1e6   :  { %v412_v35 = vadd.f32 1e-05, %v356_v34 }
 0x1e8   :  { %2186 = vrsqrt.f32 %v412_v35  ;;  %vm426_vm4 = vweird.f32 %v412_v35 }
 0x1e9   :  { %591 = vperm.xlu2 %2169, %v36_v37   ;;  %586 = vperm.xlu1 %2168, %v35_v48  }
 0x1ea   :  { %581 = vperm.xlu0 %2170, %v34_v53  }
 0x1ee   :  { %v2187_v40 = vpop.eup %2186 }
 0x1ef   :  { %v421_v42 = vmul.f32 %v2187_v40, %v412_v35  ;;  %vm427_vm3 = vweird.f32 %v2187_v40 }
 0x1f0   :  { %vm428_vm5 = vmor %vm426_vm4, %vm427_vm3 }
 0x1f1   :  { %v422_v43 = vmul.f32 %v2187_v40, %v421_v42  ;;  %2171 = vset.pattern.permute.xlu2 %v2267_v46  ;;  %2172 = vset.pattern.permute.xlu1 %v2267_v46 }
 0x1f2   :  { %596 = vperm.xlu0 %2170, %v37_v63  }
 0x1f3   :  { %v423_v49 = vmul.f32 0.5, %v422_v43 }
 0x1f5   :  { %v424_v50 = vsub.f32 1.5, %v423_v49 }
 0x1f7   :  { %v425_v51 = vmul.f32 %v2187_v40, %v424_v50 }
 0x1f9   :  { %v429_v52 = vsel %vm428_vm5, %v2187_v40, %v425_v51 }
 0x1fa   :  { %502 = vperm.xlu2 %2171, %v429_v52   ;;  %2173 = vset.pattern.permute.xlu0 %v2267_v46 }
 0x203   :  { %v335_v54 = vpop.permute.xlu0 %334 }
 0x204   :  { %v357_v55 = vsub.f32 %v2443_v7, %v335_v54 }
 0x206   :  { %v413_v56 = vadd.f32 1e-05, %v357_v55 }
 0x208   :  { %2188 = vrsqrt.f32 %v413_v56  ;;  %vm436_vm7 = vweird.f32 %v413_v56 }
 0x20e   :  { %v2189_v57 = vpop.eup %2188 }
 0x20f   :  { %v431_v58 = vmul.f32 %v2189_v57, %v413_v56  ;;  %vm437_vm6 = vweird.f32 %v2189_v57 }
 0x210   :  { %vm438_vm8 = vmor %vm436_vm7, %vm437_vm6 }
 0x211   :  { %v432_v59 = vmul.f32 %v2189_v57, %v431_v58 }
 0x213   :  { %v433_v60 = vmul.f32 0.5, %v432_v59 }
 0x215   :  { %v434_v61 = vsub.f32 1.5, %v433_v60 }
 0x217   :  { %v435_v62 = vmul.f32 %v2189_v57, %v434_v61 }
 0x219   :  { %v439_v0 = vsel %vm438_vm8, %v2189_v57, %v435_v62  ;;  %v40_v57 = vld [vmem:[%s3011_s1 + $0x38] sm:$0xff] }
 0x21a   :  { %507 = vperm.xlu1 %2172, %v439_v0  }
 0x21b   :  { %v339_v1 = vpop.permute.xlu2 %338 }
 0x21c   :  { %v359_v2 = vsub.f32 %v2458_v17, %v339_v1 }
 0x21e   :  { %v415_v3 = vadd.f32 1e-05, %v359_v2 }
 0x220   :  { %2190 = vrsqrt.f32 %v415_v3  ;;  %vm456_vm10 = vweird.f32 %v415_v3 }
 0x223   :  { %v345_v17 = vpop.permute.xlu2 %344 }
 0x224   :  { %v362_v24 = vsub.f32 %v2466_v23, %v345_v17  ;;  %v38_v17 = vld [vmem:[%s3011_s1 + $0x28] sm:$0xff] }
 0x226   :  { %v2191_v4 = vpop.eup %2190 }
 0x227   :  { %v451_v5 = vmul.f32 %v2191_v4, %v415_v3  ;;  %vm457_vm9 = vweird.f32 %v2191_v4 }
 0x228   :  { %vm458_vm11 = vmor %vm456_vm10, %vm457_vm9 }
 0x229   :  { %v452_v6 = vmul.f32 %v2191_v4, %v451_v5 }
 0x22b   :  { %v453_v7 = vmul.f32 0.5, %v452_v6  ;;  %v337_v8 = vpop.permute.xlu1 %336 }
 0x22c   :  { %v358_v10 = vsub.f32 %v2451_v12, %v337_v8  ;;  %v418_v12 = vadd.f32 1e-05, %v362_v24  ;;  %v2145_v24 = vld [vmem:[%s3012_s2 + $0x28] sm:$0xff] }
 0x22d   :  { %v454_v11 = vsub.f32 1.5, %v453_v7  ;;  %729 = vmatpush.bf16.msrb.mxu0 %v2145_v24  ;;  %2160 = vmatpush.bf16.msra.mxu2 %v2145_v24 }
 0x22e   :  { %v414_v13 = vadd.f32 1e-05, %v358_v10  ;;  %vm486_vm9 = vweird.f32 %v418_v12 }
 0x22f   :  { %v455_v15 = vmul.f32 %v2191_v4, %v454_v11 }
 0x230   :  { %2192 = vrsqrt.f32 %v414_v13  ;;  %vm446_vm13 = vweird.f32 %v414_v13 }
 0x231   :  { %v459_v18 = vsel %vm458_vm11, %v2191_v4, %v455_v15  ;;  %v372_v15 = vpop.permute.xlu2 %371 }
 0x232   :  { %517 = vperm.xlu2 %2171, %v459_v18   ;;  %v39_v18 = vld [vmem:[%s3011_s1 + $0x30] sm:$0xff] }
 0x233   :  { %v343_v20 = vpop.permute.xlu1 %342 }
 0x234   :  { %v361_v21 = vsub.f32 %v2456_v14, %v343_v20 }
 0x236   :  { %v2193_v26 = vpop.eup %2192  ;;  %v417_v27 = vadd.f32 1e-05, %v361_v21 }
 0x237   :  { %v441_v28 = vmul.f32 %v2193_v26, %v414_v13  ;;  %vm447_vm12 = vweird.f32 %v2193_v26 }
 0x238   :  { %2194 = vrsqrt.f32 %v417_v27  ;;  %vm448_vm14 = vmor %vm446_vm13, %vm447_vm12  ;;  %vm476_vm1 = vweird.f32 %v417_v27  ;;  %vm776_vm13 = vcmask 1041409  }
 0x239   :  { %v442_v30 = vmul.f32 %v2193_v26, %v441_v28  ;;  %2196 = vrsqrt.f32 %v418_v12  ;;  %v387_v21 = vpop.permute.xlu2 %386  ;;  %v2144_v28 = vld [vmem:[%s3012_s2 + $0x20] sm:$0xff] }
 0x23a   :  { %730 = vmatpush.bf16.msrb.mxu0 %v2144_v28  ;;  %2161 = vmatpush.bf16.msra.mxu2 %v2144_v28 }
 0x23b   :  { %v443_v31 = vmul.f32 0.5, %v442_v30  ;;  %v367_v13 = vpop.permute.xlu1 %366 }
 0x23c   :  { %v341_v32 = vpop.permute.xlu0 %340 }
 0x23d   :  { %v360_v34 = vsub.f32 %v2468_v25, %v341_v32  ;;  %v444_v35 = vsub.f32 1.5, %v443_v31  ;;  %v2542_v32 = vld [vmem:[%s3014_s4] sm:$0x7] }
 0x23e   :  { %v2195_v37 = vpop.eup %2194 }
 0x23f   :  { %v471_v40 = vmul.f32 %v2195_v37, %v417_v27  ;;  %v416_v42 = vadd.f32 1e-05, %v360_v34  ;;  %v445_v43 = vmul.f32 %v2193_v26, %v444_v35  ;;  %v2197_v48 = vpop.eup %2196  ;;  %vm477_vm15 = vweird.f32 %v2195_v37 }
 0x240   :  { %v481_v25 = vmul.f32 %v2197_v48, %v418_v12  ;;  %vm478_vm3 = vmor %vm476_vm1, %vm477_vm15  ;;  %vm487_vm7 = vweird.f32 %v2197_v48  ;;  %v404_v35 = vsub.f32 %v2350_v19, %v367_v13  ;;  %vm780_vm15 = vcmask 1043459  }
 0x241   :  { %v472_v14 = vmul.f32 %v2195_v37, %v471_v40  ;;  %2198 = vrsqrt.f32 %v416_v42  ;;  %v449_v23 = vsel %vm448_vm14, %v2193_v26, %v445_v43  ;;  %vm466_vm5 = vweird.f32 %v416_v42  ;;  %vm488_vm10 = vmor %vm486_vm9, %vm487_vm7  ;;  %v2528_v26 = vpop.permute.xlu2 %576 }
 0x242   :  { %512 = vperm.xlu0 %2173, %v449_v23   ;;  %v482_v59 = vmul.f32 %v2197_v48, %v481_v25  ;;  %v405_v43 = vsub.f32 %v2355_v22, %v372_v15  ;;  %vm778_vm14 = vcmask 1042434   ;;  %vm782_vm1 = vcmask 1044484  }
 0x243   :  { %v473_v49 = vmul.f32 0.5, %v472_v14  ;;  %v382_v20 = vpop.permute.xlu1 %381 }
 0x244   :  { %v347_v50 = vpop.permute.xlu0 %346  ;;  %v483_v61 = vmul.f32 0.5, %v482_v59  ;;  %v407_v22 = vsub.f32 %v2395_v44, %v382_v20 }
 0x245   :  { %v363_v51 = vsub.f32 %v2476_v29, %v347_v50  ;;  %v474_v52 = vsub.f32 1.5, %v473_v49 }
 0x246   :  { %v484_v4 = vsub.f32 1.5, %v483_v61 }
 0x247   :  { %v2199_v53 = vpop.eup %2198  ;;  %v419_v54 = vadd.f32 1e-05, %v363_v51  ;;  %v475_v55 = vmul.f32 %v2195_v37, %v474_v52 }
 0x248   :  { %v461_v56 = vmul.f32 %v2199_v53, %v416_v42  ;;  %vm467_vm4 = vweird.f32 %v2199_v53  ;;  %v485_v6 = vmul.f32 %v2197_v48, %v484_v4  ;;  %v2551_v42 = vld [vmem:[%s3015_s5] sm:$0x7] }
 0x249   :  { %2200 = vrsqrt.f32 %v419_v54  ;;  %v479_v58 = vsel %vm478_vm3, %v2195_v37, %v475_v55  ;;  %vm468_vm6 = vmor %vm466_vm5, %vm467_vm4  ;;  %vm496_vm11 = vweird.f32 %v419_v54  ;;  %v2535_v12 = vpop.permute.xlu2 %591  ;;  %v2546_v37 = vperm.slane %v2542_v32, 0 }
 0x24a   :  { %v462_v60 = vmul.f32 %v2199_v53, %v461_v56  ;;  %527 = vperm.xlu1 %2172, %v479_v58   ;;  %2176 = vset.pattern.permute.xlu0 %v2266_v9  ;;  %v489_v10 = vsel %vm488_vm10, %v2197_v48, %v485_v6  ;;  %v2555_v14 = vperm.slane %v2551_v42, 0  ;;  %vm784_vm3 = vcmask 1045509  }
 0x24b   :  { %611 = vperm.xlu0 %2176, %v40_v57   ;;  %v2530_v27 = vpop.permute.xlu1 %391  ;;  %vm786_vm4 = vcmask 1046534   ;;  %vm3018_vm5 = vcmask 1047559  }
 0x24c   :  { %v463_v29 = vmul.f32 0.5, %v462_v60  ;;  %v377_v51 = vpop.permute.xlu0 %376 }
 0x24d   :  { %v406_v15 = vsub.f32 %v2377_v39, %v377_v51 }
 0x24e   :  { %v464_v62 = vsub.f32 1.5, %v463_v29 }
 0x24f   :  { %v2201_v63 = vpop.eup %2200 }
 0x250   :  { %v491_v0 = vmul.f32 %v2201_v63, %v419_v54  ;;  %v465_v1 = vmul.f32 %v2199_v53, %v464_v62  ;;  %vm497_vm8 = vweird.f32 %v2201_v63 }
 0x251   :  { %vm498_vm12 = vmor %vm496_vm11, %vm497_vm8 }
 0x252   :  { %v492_v2 = vmul.f32 %v2201_v63, %v491_v0  ;;  %v469_v3 = vsel %vm468_vm6, %v2199_v53, %v465_v1  ;;  %v408_v0 = vsub.f32 %v2397_v45, %v387_v21 }
 0x253   :  { %522 = vperm.xlu2 %2171, %v469_v3   ;;  %v397_v30 = vpop.permute.xlu1 %396 }
 0x254   :  { %v493_v5 = vmul.f32 0.5, %v492_v2  ;;  %v503_v34 = vpop.permute.xlu2 %502  ;;  %v2563_v57 = vpop.permute.xlu0 %401  ;;  %v410_v45 = vsub.f32 %v2381_v41, %v397_v30  ;;  %v409_v30 = vsub.f32 %v2364_v36, %v2530_v27 }
 0x255   :  { %v540_v40 = vmul.f32 %v503_v34, %v404_v35 }
 0x256   :  { %v494_v7 = vsub.f32 1.5, %v493_v5 }
 0x257   :  { %v549_v23 = vmul.f32 %v2546_v37, %v540_v40 }
 0x258   :  { %v495_v8 = vmul.f32 %v2201_v63, %v494_v7 }
 0x259   :  { %v558_v19 = vadd.f32 %v2555_v14, %v549_v23 }
 0x25a   :  { %v499_v11 = vsel %vm498_vm12, %v2201_v63, %v495_v8 }
 0x25b   :  { %532 = vperm.xlu2 %2171, %v489_v10   ;;  %537 = vperm.xlu1 %2172, %v499_v11   ;;  %v2537_v31 = vpop.permute.xlu1 %586  ;;  %v566_v25 = vmax.f32 %v558_v19, 0.0 }
 0x25c   :  { %v2567_v60 = vpop.permute.xlu0 %581 }
 0x25d   :  { %v614_v62 = vadd.f32 %v2528_v26, %v566_v25 }
 0x25f   :  { %v622_v1 = vsel %vm234_vm2, %v614_v62, -inf }
 0x260   :  { %v623_v7 = vrot.slane %v622_v1, 4 }
 0x263   :  { %2175 = vset.pattern.permute.xlu2 %v2266_v9  ;;  %2174 = vset.pattern.permute.xlu1 %v2266_v9 }
 0x264   :  { %606 = vperm.xlu2 %2175, %v39_v18   ;;  %601 = vperm.xlu1 %2174, %v38_v17   ;;  %v2575_v3 = vpop.permute.xlu0 %596  ;;  %v624_v18 = vmax.f32 %v622_v1, %v623_v7 }
 0x28c   :  { %v508_v48 = vpop.permute.xlu1 %507  ;;  %v518_v55 = vpop.permute.xlu2 %517 }
 0x28d   :  { %v541_v49 = vmul.f32 %v508_v48, %v405_v43  ;;  %v543_v56 = vmul.f32 %v518_v55, %v407_v22  ;;  %v625_v43 = vrot.slane %v624_v18, 2 }
 0x28f   :  { %v550_v50 = vmul.f32 %v2546_v37, %v541_v49  ;;  %v552_v58 = vmul.f32 %v2546_v37, %v543_v56  ;;  %v626_v51 = vmax.f32 %v624_v18, %v625_v43 }
 0x291   :  { %v559_v52 = vadd.f32 %v2555_v14, %v550_v50  ;;  %v561_v59 = vadd.f32 %v2555_v14, %v552_v58  ;;  %v627_v62 = vrot.slane %v626_v51, 1 }
 0x293   :  { %v567_v53 = vmax.f32 %v559_v52, 0.0  ;;  %v569_v29 = vmax.f32 %v561_v59, 0.0 }
 0x295   :  { %v695_v54 = vpack.c.bf16 %v567_v53, %v566_v25  ;;  %v615_v61 = vadd.f32 %v2567_v60, %v567_v53  ;;  %v617_v63 = vadd.f32 %v2535_v12, %v569_v29 }
 0x297   :  { %2082 = vmatmul.msk.bf16.vlgmr.msrb.gmra.mxu0 %vm234_vm2, %v695_v54  ;;  %v629_v44 = vsel %vm234_vm2, %v615_v61, -inf  ;;  %v643_v4 = vsel %vm234_vm2, %v617_v63, -inf }
 0x298   :  { %v630_v2 = vrot.slane %v629_v44, 4  ;;  %v644_v8 = vrot.slane %v643_v4, 4 }
 0x29a   :  { %v631_v10 = vmax.f32 %v629_v44, %v630_v2  ;;  %v645_v17 = vmax.f32 %v643_v4, %v644_v8 }
 0x29c   :  { %v632_v20 = vrot.slane %v631_v10, 2  ;;  %v646_v48 = vrot.slane %v645_v17, 2 }
 0x29e   :  { %v633_v49 = vmax.f32 %v631_v10, %v632_v20  ;;  %v647_v53 = vmax.f32 %v645_v17, %v646_v48  ;;  %v2146_v48 = vld [vmem:[%s3012_s2 + $0x30] sm:$0xff] }
 0x2a0   :  { %v634_v54 = vrot.slane %v633_v49, 1  ;;  %v648_v1 = vrot.slane %v647_v53, 1 }
 0x2a2   :  { %v635_v2 = vmax.f32 %v633_v49, %v634_v54 }
 0x2ad   :  { %v523_v5 = vpop.permute.xlu2 %522 }
 0x2ae   :  { %v544_v6 = vmul.f32 %v523_v5, %v408_v0 }
 0x2b0   :  { %v553_v11 = vmul.f32 %v2546_v37, %v544_v6 }
 0x2b2   :  { %v562_v13 = vadd.f32 %v2555_v14, %v553_v11 }
 0x2b4   :  { %v570_v21 = vmax.f32 %v562_v13, 0.0  ;;  %v513_v24 = vpop.permute.xlu0 %512  ;;  %v649_v13 = vmax.f32 %v647_v53, %v648_v1 }
 0x2b5   :  { %v533_v28 = vpop.permute.xlu2 %532  ;;  %v542_v34 = vmul.f32 %v513_v24, %v406_v15  ;;  %v679_v15 = vmax.f32 %v635_v2, 0.0 }
 0x2b6   :  { %v618_v35 = vadd.f32 %v2575_v3, %v570_v21  ;;  %v546_v40 = vmul.f32 %v533_v28, %v410_v45 }
 0x2b7   :  { %v551_v23 = vmul.f32 %v2546_v37, %v542_v34  ;;  %v2147_v34 = vld [vmem:[%s3012_s2 + $0x38] sm:$0xff] }
 0x2b8   :  { %v650_v19 = vsel %vm234_vm2, %v618_v35, -inf  ;;  %v555_v39 = vmul.f32 %v2546_v37, %v546_v40  ;;  %v681_v35 = vmax.f32 %v649_v13, 0.0  ;;  %v753_v40 = vpack.c.bf16 %v679_v15, %v679_v15  ;;  %812 = vmatpush.bf16.msrb.mxu3 %v2147_v34 }
 0x2b9   :  { %v651_v50 = vrot.slane %v650_v19, 4  ;;  %v560_v41 = vadd.f32 %v2555_v14, %v551_v23 }
 0x2ba   :  { %v2590_v55 = vadd.f32 %v2555_v14, %v555_v39 }
 0x2bb   :  { %v652_v52 = vmax.f32 %v650_v19, %v651_v50  ;;  %v568_v25 = vmax.f32 %v560_v41, 0.0  ;;  %v411_v19 = vsub.f32 %v2400_v47, %v2563_v57  ;;  %v755_v50 = vpack.c.bf16 %v681_v35, %v681_v35 }
 0x2bc   :  { %v528_v22 = vpop.permute.xlu1 %527  ;;  %v572_v27 = vmax.f32 %v2590_v55, 0.0  ;;  %v769_v41 = vunpack.c.l.b16 %v753_v40  ;;  %813 = vmatpush.bf16.msrb.mxu3 %v2146_v48 }
 0x2bd   :  { %v653_v56 = vrot.slane %v652_v52, 2  ;;  %v616_v58 = vadd.f32 %v2537_v31, %v568_v25  ;;  %v545_v59 = vmul.f32 %v528_v22, %v409_v30  ;;  %v696_v61 = vpack.c.bf16 %v569_v29, %v568_v25 }
 0x2be   :  { %v2598_v5 = vpop.permute.xlu2 %606  ;;  %v628_v29 = vmax.f32 %v626_v51, %v627_v62  ;;  %v771_v47 = vunpack.c.l.b16 %v755_v50 }
 0x2bf   :  { %v654_v63 = vmax.f32 %v652_v52, %v653_v56  ;;  %v636_v44 = vsel %vm234_vm2, %v616_v58, -inf  ;;  %v554_v36 = vmul.f32 %v2546_v37, %v545_v59  ;;  %2083 = vmatmul.msk.bf16.vlgmr.msra.gmra.mxu2 %vm234_vm2, %v696_v61  ;;  %v620_v11 = vadd.f32 %v2598_v5, %v572_v27 }
 0x2c0   :  { %v637_v0 = vrot.slane %v636_v44, 4  ;;  %v678_v20 = vmax.f32 %v628_v29, 0.0  ;;  %940 = vmatpush.msra.mxu3 %v2360_v33 }
 0x2c1   :  { %v563_v4 = vadd.f32 %v2555_v14, %v554_v36  ;;  %v655_v6 = vrot.slane %v654_v63, 1  ;;  %v664_v28 = vsel %vm234_vm2, %v620_v11, -inf }
 0x2c2   :  { %v638_v7 = vmax.f32 %v636_v44, %v637_v0  ;;  %v665_v49 = vrot.slane %v664_v28, 4  ;;  %941 = vmatpush.msra.mxu3 %v2360_v33 }
 0x2c3   :  { %v571_v8 = vmax.f32 %v563_v4, 0.0  ;;  %v656_v45 = vmax.f32 %v654_v63, %v655_v6  ;;  %v2619_v63 = vpop.permute.xlu0 %611 }
 0x2c4   :  { %v639_v10 = vrot.slane %v638_v7, 2  ;;  %v666_v54 = vmax.f32 %v664_v28, %v665_v49  ;;  %942 = vmatpush.msra.mxu3 %v2360_v33 }
 0x2c5   :  { %v697_v18 = vpack.c.bf16 %v571_v8, %v570_v21  ;;  %v682_v43 = vmax.f32 %v656_v45, 0.0  ;;  %v752_v21 = vpack.c.bf16 %v678_v20, %v678_v20 }
 0x2c6   :  { %v640_v17 = vmax.f32 %v638_v7, %v639_v10  ;;  %v667_v62 = vrot.slane %v666_v54, 2  ;;  %943 = vmatpush.msra.mxu3 %v2360_v33 }
 0x2c7   :  { %v756_v51 = vpack.c.bf16 %v682_v43, %v682_v43  ;;  %v768_v53 = vunpack.c.l.b16 %v752_v21 }
 0x2c8   :  { %v641_v24 = vrot.slane %v640_v17, 1  ;;  %v668_v2 = vmax.f32 %v666_v54, %v667_v62  ;;  %944 = vmatpush.msra.mxu3 %v2371_v38 }
 0x2c9   :  { %v777_v57 = vsel %vm776_vm13, %v769_v41, %v768_v53  ;;  %v772_v58 = vunpack.c.l.b16 %v756_v51  ;;  %v851_v53 = vperm.slane %v2347_v16, 1 }
 0x2ca   :  { %v642_v23 = vmax.f32 %v640_v17, %v641_v24  ;;  %945 = vmatpush.msra.mxu3 %v2371_v38  ;;  %v669_v10 = vrot.slane %v668_v2, 1 }
 0x2cc   :  { %v680_v39 = vmax.f32 %v642_v23, 0.0  ;;  %946 = vmatpush.msra.mxu3 %v2371_v38 }
 0x2cd   :  { %v538_v30 = vpop.permute.xlu1 %537 }
 0x2ce   :  { %v754_v52 = vpack.c.bf16 %v680_v39, %v680_v39  ;;  %v547_v25 = vmul.f32 %v538_v30, %v411_v19  ;;  %947 = vmatpush.msra.mxu3 %v2371_v38 }
 0x2cf   :  { %2084 = vmatmul.msk.bf16.gmra.mxu2 %vm234_vm2, %v697_v18  ;;  %v670_v18 = vmax.f32 %v668_v2, %v669_v10 }
 0x2d0   :  { %v770_v22 = vunpack.c.l.b16 %v754_v52  ;;  %v556_v56 = vmul.f32 %v2546_v37, %v547_v25 }
 0x2d1   :  { %v684_v28 = vmax.f32 %v670_v18, 0.0 }
 0x2d2   :  { %v565_v59 = vadd.f32 %v2555_v14, %v556_v56  ;;  %v779_v61 = vsel %vm778_vm14, %v770_v22, %v777_v57 }
 0x2d3   :  { %v781_v44 = vsel %vm780_vm15, %v771_v47, %v779_v61  ;;  %v758_v23 = vpack.c.bf16 %v684_v28, %v684_v28 }
 0x2d4   :  { %v573_v37 = vmax.f32 %v565_v59, 0.0  ;;  %v783_v36 = vsel %vm782_vm1, %v772_v58, %v781_v44 }
 0x2d5   :  { %v774_v38 = vunpack.c.l.b16 %v758_v23 }
 0x2d6   :  { %v621_v0 = vadd.f32 %v2619_v63, %v573_v37  ;;  %v2626_v1 = vpop.permute.xlu1 %601  ;;  %v698_v15 = vpack.c.bf16 %v573_v37, %v572_v27 }
 0x2d7   :  { %v619_v14 = vadd.f32 %v2626_v1, %v571_v8 }
 0x2d8   :  { %v671_v4 = vsel %vm234_vm2, %v621_v0, -inf }
 0x2d9   :  { %v672_v6 = vrot.slane %v671_v4, 4  ;;  %v657_v7 = vsel %vm234_vm2, %v619_v14, -inf }
 0x2da   :  { %v658_v29 = vrot.slane %v657_v7, 4 }
 0x2db   :  { %v673_v11 = vmax.f32 %v671_v4, %v672_v6 }
 0x2dc   :  { %v659_v33 = vmax.f32 %v657_v7, %v658_v29 }
 0x2dd   :  { %v674_v13 = vrot.slane %v673_v11, 2 }
 0x2de   :  { %v660_v8 = vrot.slane %v659_v33, 2 }
 0x2df   :  { %v675_v45 = vmax.f32 %v673_v11, %v674_v13  ;;  %2085 = vmatmul.msk.bf16.gmra.mxu2 %vm234_vm2, %v698_v15 }
 0x2e0   :  { %v661_v17 = vmax.f32 %v659_v33, %v660_v8 }
 0x2e1   :  { %v676_v20 = vrot.slane %v675_v45, 1 }
 0x2e2   :  { %v662_v24 = vrot.slane %v661_v17, 1 }
 0x2e3   :  { %v677_v34 = vmax.f32 %v675_v45, %v676_v20 }
 0x2e4   :  { %v663_v35 = vmax.f32 %v661_v17, %v662_v24 }
 0x2e5   :  { %v685_v40 = vmax.f32 %v677_v34, 0.0 }
 0x2e6   :  { %v683_v43 = vmax.f32 %v663_v35, 0.0 }
 0x2e7   :  { %v759_v48 = vpack.c.bf16 %v685_v40, %v685_v40 }
 0x2e8   :  { %v757_v21 = vpack.c.bf16 %v683_v43, %v683_v43 }
 0x2e9   :  { %v775_v27 = vunpack.c.l.b16 %v759_v48 }
 0x2ea   :  { %v773_v55 = vunpack.c.l.b16 %v757_v21 }
 0x2ec   :  { %v785_v49 = vsel %vm784_vm3, %v773_v55, %v783_v36 }
 0x2ed   :  { %v787_v19 = vsel %vm786_vm4, %v774_v38, %v785_v49 }
 0x2ee   :  { %v789_v39 = vsel %vm3018_vm5, %v775_v27, %v787_v19 }
 0x2ef   :  { %v790_v50 = vpack.c.b16 %v789_v39, %v789_v39 }
 0x2f1   :  { %2094 = vmatmul.msk.bf16.vlgmr.msrb.gmra.mxu3 %vm234_vm2, %v790_v50 }
 0x314   :  { %v732_v52 = vpop.f32.mrf.mxu0 }
 0x31c   :  { %v734_v36 = vpop.f32.mrf.mxu0 }
 0x342   :  { %v737_v41 = vpop.f32.mrf.mxu2 }
 0x34a   :  { %v739_v30 = vpop.f32.mrf.mxu2 }
 0x352   :  { %v742_v51 = vpop.f32.mrf.mxu2 }
 0x35a   :  { %v744_v25 = vpop.f32.mrf.mxu2 }
 0x362   :  { %v747_v7 = vpop.f32.mrf.mxu2 }
 0x36a   :  { %v749_v23 = vpop.f32.mrf.mxu2 }
 0x374   :  { %v815_v54 = vpop.f32.mrf.mxu3 }
 0x375   :  { %v827_v22 = vperm.slane %v815_v54, 0  ;;  %v821_v56 = vrot.slane %v815_v54, 2  ;;  %v820_v47 = vrot.slane %v815_v54, 1  ;;  %v822_v57 = vrot.slane %v815_v54, 3 }
 0x376   :  { %v824_v58 = vrot.slane %v815_v54, 5  ;;  %v823_v59 = vrot.slane %v815_v54, 4  ;;  %v825_v16 = vrot.slane %v815_v54, 6  ;;  %v826_v15 = vrot.slane %v815_v54, 7 }
 0x377   :  { %v843_v61 = vadd.f32 %v827_v22, %v732_v52  ;;  %v829_v62 = vperm.slane %v821_v56, 0  ;;  %v828_v44 = vperm.slane %v820_v47, 0  ;;  %v830_v37 = vperm.slane %v822_v57, 0 }
 0x378   :  { %v832_v0 = vperm.slane %v824_v58, 0  ;;  %v831_v6 = vperm.slane %v823_v59, 0  ;;  %v833_v24 = vperm.slane %v825_v16, 0  ;;  %v834_v35 = vperm.slane %v826_v15, 0 }
 0x379   :  { %v2643_v2 = vadd.f32 %v851_v53, %v843_v61  ;;  %v845_v14 = vadd.f32 %v829_v62, %v737_v41  ;;  %v844_v4 = vadd.f32 %v828_v44, %v734_v36  ;;  %v846_v33 = vadd.f32 %v830_v37, %v739_v30 }
 0x37a   :  { %v848_v45 = vadd.f32 %v832_v0, %v744_v25  ;;  %v847_v17 = vadd.f32 %v831_v6, %v742_v51  ;;  %v849_v43 = vadd.f32 %v833_v24, %v747_v7  ;;  %v850_v55 = vadd.f32 %v834_v35, %v749_v23 }
 0x37b   :  { %v860_v29 = vmul.f32 %v2643_v2, %v2643_v2  ;;  %v2647_v10 = vadd.f32 %v851_v53, %v845_v14  ;;  %v2649_v11 = vadd.f32 %v851_v53, %v844_v4  ;;  %v2658_v20 = vadd.f32 %v851_v53, %v846_v33 }
 0x37c   :  { %v817_v13 = vpop.f32.mrf.mxu3  ;;  %v2660_v28 = vadd.f32 %v851_v53, %v848_v45  ;;  %v2662_v34 = vadd.f32 %v851_v53, %v847_v17  ;;  %v2673_v38 = vadd.f32 %v851_v53, %v849_v43  ;;  %v2675_v27 = vadd.f32 %v851_v53, %v850_v55 }
 0x37d   :  { %876 = vrot.lane.b32.xlu1 %v860_v29, %s2263_s23  ;;  %v862_v8 = vmul.f32 %v2647_v10, %v2647_v10  ;;  %v861_v18 = vmul.f32 %v2649_v11, %v2649_v11  ;;  %v863_v40 = vmul.f32 %v2658_v20, %v2658_v20 }
 0x37e   :  { %v865_v48 = vmul.f32 %v2660_v28, %v2660_v28  ;;  %v864_v21 = vmul.f32 %v2662_v34, %v2662_v34  ;;  %v866_v49 = vmul.f32 %v2673_v38, %v2673_v38  ;;  %v867_v19 = vmul.f32 %v2675_v27, %v2675_v27 }
 0x37f   :  { %880 = vrot.lane.b32.xlu0 %v862_v8, %s2263_s23  ;;  %878 = vrot.lane.b32.xlu2 %v861_v18, %s2263_s23 }
 0x385   :  { %882 = vrot.lane.b32.xlu1 %v863_v40, %s2263_s23 }
 0x387   :  { %886 = vrot.lane.b32.xlu0 %v865_v48, %s2263_s23  ;;  %884 = vrot.lane.b32.xlu2 %v864_v21, %s2263_s23 }
 0x38d   :  { %888 = vrot.lane.b32.xlu1 %v866_v49, %s2263_s23 }
 0x38f   :  { %890 = vrot.lane.b32.xlu2 %v867_v19, %s2263_s23 }
 0x3d9   :  { %v879_v41 = vpop.permute.xlu2 %878 }
 0x3da   :  { %v901_v30 = vsel %vm234_vm2, %v2649_v11, %v879_v41 }
 0x3e1   :  { %v885_v54 = vpop.permute.xlu2 %884 }
 0x3e2   :  { %v904_v22 = vsel %vm234_vm2, %v2662_v34, %v885_v54 }
 0x3e9   :  { %v891_v59 = vpop.permute.xlu2 %890 }
 0x3ea   :  { %v907_v61 = vsel %vm234_vm2, %v2675_v27, %v891_v59 }
 0x3ef   :  { %v877_v39 = vpop.permute.xlu1 %876 }
 0x3f0   :  { %v900_v50 = vsel %vm234_vm2, %v2643_v2, %v877_v39 }
 0x3f1   :  { %2095 = vmatmul.msk.f32.vlgmr.msra.gmra.mxu3 %vm3017_vm0, %v900_v50  ;;  %v881_v51 = vpop.permute.xlu0 %880 }
 0x3f2   :  { %v902_v52 = vsel %vm234_vm2, %v2647_v10, %v881_v51 }
 0x3f7   :  { %v883_v25 = vpop.permute.xlu1 %882 }
 0x3f8   :  { %v903_v53 = vsel %vm234_vm2, %v2658_v20, %v883_v25 }
 0x3f9   :  { %2096 = vmatmul.msk.f32.gmra.mxu3 %vm3017_vm0, %v901_v30  ;;  %v887_v56 = vpop.permute.xlu0 %886 }
 0x3fa   :  { %v905_v47 = vsel %vm234_vm2, %v2660_v28, %v887_v56 }
 0x3ff   :  { %v889_v57 = vpop.permute.xlu1 %888 }
 0x400   :  { %v906_v58 = vsel %vm234_vm2, %v2673_v38, %v889_v57 }
 0x401   :  { %2097 = vmatmul.msk.f32.gmra.mxu3 %vm3017_vm0, %v902_v52 }
 0x409   :  { %2098 = vmatmul.msk.f32.gmra.mxu3 %vm3017_vm0, %v903_v53 }
 0x411   :  { %2099 = vmatmul.msk.f32.gmra.mxu3 %vm3017_vm0, %v904_v22 }
 0x419   :  { %2100 = vmatmul.msk.f32.gmra.mxu3 %vm3017_vm0, %v905_v47 }
 0x421   :  { %2101 = vmatmul.msk.f32.gmra.mxu3 %vm3017_vm0, %v906_v58 }
 0x429   :  { %2102 = vmatmul.msk.f32.gmra.mxu3 %vm3017_vm0, %v907_v61 }
 0x474   :  { %v949_v62 = vpop.f32.mrf.mxu3 }
 0x475   :  { %v973_v44 = vmul.f32 0.03125, %v949_v62 }
 0x477   :  { %v981_v37 = vmul.f32 %v973_v44, %v973_v44 }
 0x479   :  { %997 = vrot.lane.b32.xlu0 %v981_v37, %s2265_s0 }
 0x47c   :  { %v952_v36 = vpop.f32.mrf.mxu3 }
 0x47d   :  { %v974_v0 = vmul.f32 0.03125, %v952_v36 }
 0x47f   :  { %v982_v14 = vmul.f32 %v974_v0, %v974_v0 }
 0x481   :  { %999 = vrot.lane.b32.xlu1 %v982_v14, %s2265_s0 }
 0x484   :  { %v955_v4 = vpop.f32.mrf.mxu3 }
 0x485   :  { %v975_v6 = vmul.f32 0.03125, %v955_v4 }
 0x487   :  { %v983_v7 = vmul.f32 %v975_v6, %v975_v6 }
 0x489   :  { %1001 = vrot.lane.b32.xlu2 %v983_v7, %s2265_s0 }
 0x48c   :  { %v958_v16 = vpop.f32.mrf.mxu3 }
 0x48d   :  { %v2710_v29 = vmul.f32 0.03125, %v958_v16 }
 0x48f   :  { %v984_v33 = vmul.f32 %v2710_v29, %v2710_v29 }
 0x491   :  { %1003 = vrot.lane.b32.xlu0 %v984_v33, %s2265_s0 }
 0x494   :  { %v961_v13 = vpop.f32.mrf.mxu3 }
 0x495   :  { %v2715_v15 = vmul.f32 0.03125, %v961_v13 }
 0x497   :  { %v985_v8 = vmul.f32 %v2715_v15, %v2715_v15 }
 0x499   :  { %1005 = vrot.lane.b32.xlu1 %v985_v8, %s2265_s0 }
 0x49c   :  { %v964_v18 = vpop.f32.mrf.mxu3 }
 0x49d   :  { %v978_v45 = vmul.f32 0.03125, %v964_v18 }
 0x49f   :  { %v986_v17 = vmul.f32 %v978_v45, %v978_v45 }
 0x4a1   :  { %1007 = vrot.lane.b32.xlu2 %v986_v17, %s2265_s0 }
 0x4a4   :  { %v967_v24 = vpop.f32.mrf.mxu3 }
 0x4a5   :  { %v2721_v35 = vmul.f32 0.03125, %v967_v24 }
 0x4a7   :  { %v987_v40 = vmul.f32 %v2721_v35, %v2721_v35 }
 0x4a9   :  { %1031 = vperm.xlu2 %2175, %v973_v44   ;;  %1009 = vrot.lane.b32.xlu0 %v987_v40, %s2265_s0 }
 0x4ac   :  { %v970_v43 = vpop.f32.mrf.mxu3 }
 0x4ad   :  { %v2726_v23 = vmul.f32 0.03125, %v970_v43 }
 0x4af   :  { %v988_v48 = vmul.f32 %v2726_v23, %v2726_v23 }
 0x4b1   :  { %1046 = vperm.xlu2 %2175, %v2710_v29   ;;  %1036 = vperm.xlu0 %2176, %v974_v0  }
 0x4b2   :  { %1011 = vrot.lane.b32.xlu1 %v988_v48, %s2265_s0 }
 0x4b9   :  { %1051 = vperm.xlu2 %2175, %v2715_v15   ;;  %2177 = vset.pattern.permute.xlu0 %v2267_v46 }
 0x4ba   :  { %1041 = vperm.xlu1 %2174, %v975_v6  }
 0x4c1   :  { %1056 = vperm.xlu2 %2175, %v978_v45  }
 0x4c2   :  { %1061 = vperm.xlu1 %2174, %v2721_v35  }
 0x4c9   :  { %2180 = vset.pattern.permute.xlu2 %v2267_v46 }
 0x4ca   :  { %2178 = vset.pattern.permute.xlu1 %v2267_v46 }
 0x4e3   :  { %v1002_v21 = vpop.permute.xlu2 %1001 }
 0x4e4   :  { %v1023_v49 = vsub.f32 %v975_v6, %v1002_v21 }
 0x4e6   :  { %v1079_v50 = vadd.f32 1e-05, %v1023_v49 }
 0x4eb   :  { %v998_v55 = vpop.permute.xlu0 %997 }
 0x4ec   :  { %v1021_v19 = vsub.f32 %v973_v44, %v998_v55 }
 0x4ee   :  { %v1077_v39 = vadd.f32 1e-05, %v1021_v19 }
 0x4f0   :  { %2202 = vrsqrt.f32 %v1077_v39  ;;  %vm1091_vm7 = vweird.f32 %v1077_v39 }
 0x4f1   :  { %2204 = vrsqrt.f32 %v1079_v50 }
 0x4f3   :  { %v1000_v41 = vpop.permute.xlu1 %999 }
 0x4f4   :  { %v1022_v30 = vsub.f32 %v974_v0, %v1000_v41 }
 0x4f6   :  { %v2203_v51 = vpop.eup %2202  ;;  %v1078_v52 = vadd.f32 1e-05, %v1022_v30 }
 0x4f7   :  { %v1086_v25 = vmul.f32 %v2203_v51, %v1077_v39  ;;  %v2205_v54 = vpop.eup %2204  ;;  %vm1092_vm6 = vweird.f32 %v2203_v51 }
 0x4f8   :  { %2206 = vrsqrt.f32 %v1078_v52  ;;  %v1106_v57 = vmul.f32 %v2205_v54, %v1079_v50  ;;  %vm1093_vm8 = vmor %vm1091_vm7, %vm1092_vm6  ;;  %vm1101_vm10 = vweird.f32 %v1078_v52  ;;  %vm1112_vm12 = vweird.f32 %v2205_v54 }
 0x4f9   :  { %v1087_v53 = vmul.f32 %v2203_v51, %v1086_v25  ;;  %vm1111_vm6 = vweird.f32 %v1079_v50 }
 0x4fa   :  { %v1107_v37 = vmul.f32 %v2205_v54, %v1106_v57  ;;  %vm1113_vm7 = vmor %vm1111_vm6, %vm1112_vm12 }
 0x4fb   :  { %v1088_v22 = vmul.f32 0.5, %v1087_v53  ;;  %v1008_v56 = vpop.permute.xlu2 %1007 }
 0x4fc   :  { %v1026_v47 = vsub.f32 %v978_v45, %v1008_v56  ;;  %v1108_v7 = vmul.f32 0.5, %v1107_v37 }
 0x4fd   :  { %v1089_v58 = vsub.f32 1.5, %v1088_v22 }
 0x4fe   :  { %v2207_v59 = vpop.eup %2206  ;;  %v1082_v61 = vadd.f32 1e-05, %v1026_v47  ;;  %v1109_v24 = vsub.f32 1.5, %v1108_v7 }
 0x4ff   :  { %v1096_v62 = vmul.f32 %v2207_v59, %v1078_v52  ;;  %v1090_v44 = vmul.f32 %v2203_v51, %v1089_v58  ;;  %vm1102_vm9 = vweird.f32 %v2207_v59 }
 0x500   :  { %2208 = vrsqrt.f32 %v1082_v61  ;;  %vm1103_vm11 = vmor %vm1101_vm10, %vm1102_vm9  ;;  %v1110_v21 = vmul.f32 %v2205_v54, %v1109_v24  ;;  %vm1141_vm10 = vweird.f32 %v1082_v61 }
 0x501   :  { %v1097_v36 = vmul.f32 %v2207_v59, %v1096_v62  ;;  %v1094_v0 = vsel %vm1093_vm8, %v2203_v51, %v1090_v44 }
 0x502   :  { %1167 = vperm.xlu0 %2177, %v1094_v0   ;;  %v1114_v39 = vsel %vm1113_vm7, %v2205_v54, %v1110_v21 }
 0x503   :  { %v1098_v14 = vmul.f32 0.5, %v1097_v36  ;;  %v1004_v4 = vpop.permute.xlu0 %1003  ;;  %v1032_v24 = vpop.permute.xlu2 %1031 }
 0x504   :  { %v1024_v6 = vsub.f32 %v2710_v29, %v1004_v4 }
 0x505   :  { %v1099_v16 = vsub.f32 1.5, %v1098_v14 }
 0x506   :  { %v2209_v33 = vpop.eup %2208  ;;  %v1080_v13 = vadd.f32 1e-05, %v1024_v6 }
 0x507   :  { %v1136_v8 = vmul.f32 %v2209_v33, %v1082_v61  ;;  %v1100_v18 = vmul.f32 %v2207_v59, %v1099_v16  ;;  %vm1142_vm8 = vweird.f32 %v2209_v33 }
 0x508   :  { %2210 = vrsqrt.f32 %v1080_v13  ;;  %vm1143_vm0 = vmor %vm1141_vm10, %vm1142_vm8 }
 0x509   :  { %v1137_v45 = vmul.f32 %v2209_v33, %v1136_v8  ;;  %v1104_v17 = vsel %vm1103_vm11, %v2207_v59, %v1100_v18  ;;  %vm1121_vm11 = vweird.f32 %v1080_v13 }
 0x50a   :  { %1172 = vperm.xlu1 %2178, %v1104_v17  }
 0x50b   :  { %v1006_v40 = vpop.permute.xlu1 %1005  ;;  %v1138_v48 = vmul.f32 0.5, %v1137_v45 }
 0x50c   :  { %v1025_v43 = vsub.f32 %v2715_v15, %v1006_v40  ;;  %v2149_v40 = vld [vmem:[%s3012_s2 + $0x48] sm:$0xff] }
 0x50d   :  { %v1139_v41 = vsub.f32 1.5, %v1138_v48  ;;  %1354 = vmatpush.bf16.msrb.mxu2 %v2149_v40  ;;  %v1047_v48 = vpop.permute.xlu2 %1046 }
 0x50e   :  { %v2211_v29 = vpop.eup %2210  ;;  %v1081_v55 = vadd.f32 1e-05, %v1025_v43  ;;  %v2148_v43 = vld [vmem:[%s3012_s2 + $0x40] sm:$0xff] }
 0x50f   :  { %v1116_v49 = vmul.f32 %v2211_v29, %v1080_v13  ;;  %vm1122_vm9 = vweird.f32 %v2211_v29  ;;  %v1140_v52 = vmul.f32 %v2209_v33, %v1139_v41 }
 0x510   :  { %2212 = vrsqrt.f32 %v1081_v55  ;;  %vm1123_vm5 = vmor %vm1121_vm11, %vm1122_vm9  ;;  %vm1131_vm6 = vweird.f32 %v1081_v55 }
 0x511   :  { %v1117_v19 = vmul.f32 %v2211_v29, %v1116_v49  ;;  %v1144_v56 = vsel %vm1143_vm0, %v2209_v33, %v1140_v52  ;;  %1355 = vmatpush.bf16.msrb.mxu2 %v2148_v43 }
 0x512   :  { %1177 = vperm.xlu1 %2178, %v1114_v39   ;;  %v1069_v39 = vsub.f32 %v2643_v2, %v1032_v24 }
 0x513   :  { %v1118_v30 = vmul.f32 0.5, %v1117_v19 }
 0x515   :  { %v1119_v51 = vsub.f32 1.5, %v1118_v30 }
 0x516   :  { %v2213_v25 = vpop.eup %2212 }
 0x517   :  { %v1126_v15 = vmul.f32 %v2213_v25, %v1081_v55  ;;  %v1120_v53 = vmul.f32 %v2211_v29, %v1119_v51  ;;  %vm1132_vm12 = vweird.f32 %v2213_v25  ;;  %v1052_v55 = vpop.permute.xlu2 %1051  ;;  %v2757_v51 = vperm.slane %v2551_v42, 1 }
 0x518   :  { %vm1133_vm7 = vmor %vm1131_vm6, %vm1132_vm12  ;;  %vm3019_vm12 = vcmask 1047559   ;;  %vm3020_vm6 = vcmask 523264  }
 0x519   :  { %v1127_v22 = vmul.f32 %v2213_v25, %v1126_v15  ;;  %v1124_v50 = vsel %vm1123_vm5, %v2211_v29, %v1120_v53 }
 0x51a   :  { %1182 = vperm.xlu0 %2177, %v1124_v50   ;;  %1192 = vperm.xlu1 %2178, %v1144_v56  }
 0x51b   :  { %v1128_v54 = vmul.f32 0.5, %v1127_v22  ;;  %v1010_v47 = vpop.permute.xlu0 %1009 }
 0x51c   :  { %v1027_v57 = vsub.f32 %v2721_v35, %v1010_v47 }
 0x51d   :  { %v1129_v58 = vsub.f32 1.5, %v1128_v54 }
 0x51e   :  { %v1083_v59 = vadd.f32 1e-05, %v1027_v57 }
 0x51f   :  { %v1130_v62 = vmul.f32 %v2213_v25, %v1129_v58  ;;  %v1057_v53 = vpop.permute.xlu2 %1056  ;;  %v1073_v58 = vsub.f32 %v2662_v34, %v1052_v55 }
 0x520   :  { %2214 = vrsqrt.f32 %v1083_v59  ;;  %vm1151_vm5 = vweird.f32 %v1083_v59 }
 0x521   :  { %v1134_v61 = vsel %vm1133_vm7, %v2213_v25, %v1130_v62  ;;  %v1072_v62 = vsub.f32 %v2658_v20, %v1047_v48  ;;  %vm3021_vm7 = vmmov %vm3020_vm6 }
 0x522   :  { %1187 = vperm.xlu2 %2180, %v1134_v61   ;;  %2179 = vset.pattern.permute.xlu0 %v2266_v9 }
 0x523   :  { %1066 = vperm.xlu0 %2179, %v2726_v23   ;;  %v1037_v29 = vpop.permute.xlu0 %1036 }
 0x524   :  { %v1012_v44 = vpop.permute.xlu1 %1011  ;;  %v1070_v30 = vsub.f32 %v2649_v11, %v1037_v29 }
 0x525   :  { %v1028_v37 = vsub.f32 %v2726_v23, %v1012_v44  ;;  %v1074_v44 = vsub.f32 %v2660_v28, %v1057_v53 }
 0x526   :  { %v2215_v36 = vpop.eup %2214 }
 0x527   :  { %v1146_v0 = vmul.f32 %v2215_v36, %v1083_v59  ;;  %v1084_v14 = vadd.f32 1e-05, %v1028_v37  ;;  %vm1152_vm0 = vweird.f32 %v2215_v36 }
 0x528   :  { %vm1153_vm8 = vmor %vm1151_vm5, %vm1152_vm0 }
 0x529   :  { %v1147_v35 = vmul.f32 %v2215_v36, %v1146_v0  ;;  %2216 = vrsqrt.f32 %v1084_v14  ;;  %vm1161_vm10 = vweird.f32 %v1084_v14  ;;  %vm3022_vm0 = vmmov %vm3020_vm6 }
 0x52a   :  { %vm3023_vm5 = vmmov %vm3022_vm0 }
 0x52b   :  { %v1148_v4 = vmul.f32 0.5, %v1147_v35 }
 0x52c   :  { %v1042_v21 = vpop.permute.xlu1 %1041 }
 0x52d   :  { %v1149_v6 = vsub.f32 1.5, %v1148_v4 }
 0x52f   :  { %v2217_v7 = vpop.eup %2216  ;;  %v1150_v16 = vmul.f32 %v2215_v36, %v1149_v6 }
 0x530   :  { %v1156_v33 = vmul.f32 %v2217_v7, %v1084_v14  ;;  %vm1162_vm9 = vweird.f32 %v2217_v7 }
 0x531   :  { %v1154_v13 = vsel %vm1153_vm8, %v2215_v36, %v1150_v16  ;;  %vm1163_vm11 = vmor %vm1161_vm10, %vm1162_vm9 }
 0x532   :  { %v1157_v8 = vmul.f32 %v2217_v7, %v1156_v33  ;;  %1197 = vperm.xlu2 %2180, %v1154_v13   ;;  %vm3024_vm8 = vmmov %vm3022_vm0 }
 0x533   :  { %vm3025_vm9 = vmmov %vm3022_vm0 }
 0x534   :  { %v1158_v18 = vmul.f32 0.5, %v1157_v8  ;;  %v1062_v49 = vpop.permute.xlu1 %1061  ;;  %vm3026_vm10 = vmmov %vm3022_vm0 }
 0x535   :  { %v1075_v4 = vsub.f32 %v2673_v38, %v1062_v49 }
 0x536   :  { %v1159_v45 = vsub.f32 1.5, %v1158_v18 }
 0x538   :  { %v1160_v23 = vmul.f32 %v2217_v7, %v1159_v45 }
 0x53a   :  { %v1164_v17 = vsel %vm1163_vm11, %v2217_v7, %v1160_v23  ;;  %2182 = vset.pattern.permute.xlu2 %v2266_v9  ;;  %vm3027_vm11 = vmmov %vm3022_vm0 }
 0x53b   :  { %1202 = vperm.xlu1 %2178, %v1164_v17  }
 0x543   :  { %2181 = vset.pattern.permute.xlu1 %v2266_v9  ;;  %v2753_v9 = vperm.slane %v2542_v32, 1  ;;  %v1071_v32 = vsub.f32 %v2647_v10, %v1042_v21 }
 0x574   :  { %v1168_v19 = vpop.permute.xlu0 %1167 }
 0x575   :  { %v1205_v41 = vmul.f32 %v1168_v19, %v1069_v39 }
 0x577   :  { %v1214_v52 = vmul.f32 %v2753_v9, %v1205_v41 }
 0x579   :  { %v1223_v22 = vadd.f32 %v2757_v51, %v1214_v52 }
 0x57b   :  { %v1231_v56 = vmax.f32 %v1223_v22, 0.0 }
 0x57c   :  { %v1173_v25 = vpop.permute.xlu1 %1172  ;;  %v1188_v42 = vpop.permute.xlu2 %1187 }
 0x57d   :  { %v1206_v15 = vmul.f32 %v1173_v25, %v1070_v30  ;;  %v1209_v61 = vmul.f32 %v1188_v42, %v1073_v58  ;;  %v1239_v18 = vadd.f32 %v1231_v56, %v2528_v26 }
 0x57f   :  { %v1215_v50 = vmul.f32 %v2753_v9, %v1206_v15  ;;  %v1218_v6 = vmul.f32 %v2753_v9, %v1209_v61  ;;  %v1247_v48 = vsel %vm234_vm2, %v1239_v18, -inf }
 0x580   :  { %v1248_v41 = vrot.slane %v1247_v48, 4 }
 0x581   :  { %v1224_v2 = vadd.f32 %v2757_v51, %v1215_v50  ;;  %v1227_v28 = vadd.f32 %v2757_v51, %v1218_v6 }
 0x582   :  { %v1249_v50 = vmax.f32 %v1247_v48, %v1248_v41 }
 0x583   :  { %v1232_v54 = vmax.f32 %v1224_v2, 0.0  ;;  %v1235_v40 = vmax.f32 %v1227_v28, 0.0 }
 0x584   :  { %v1178_v47 = vpop.permute.xlu1 %1177 }
 0x585   :  { %v1320_v11 = vpack.c.bf16 %v1232_v54, %v1231_v56  ;;  %v1207_v57 = vmul.f32 %v1178_v47, %v1071_v32  ;;  %v1240_v8 = vadd.f32 %v1232_v54, %v2567_v60  ;;  %v1243_v19 = vadd.f32 %v1235_v40, %v2575_v3 }
 0x587   :  { %2119 = vmatmul.msk.bf16.vlgmr.msrb.gmra.mxu2 %vm234_vm2, %v1320_v11  ;;  %v1216_v59 = vmul.f32 %v2753_v9, %v1207_v57  ;;  %v1254_v43 = vsel %vm234_vm2, %v1240_v8, -inf  ;;  %v1275_v53 = vsel %vm234_vm2, %v1243_v19, -inf  ;;  %v1250_v57 = vrot.slane %v1249_v50, 2 }
 0x588   :  { %v1255_v39 = vrot.slane %v1254_v43, 4  ;;  %v1276_v54 = vrot.slane %v1275_v53, 4 }
 0x589   :  { %v1225_v10 = vadd.f32 %v2757_v51, %v1216_v59 }
 0x58a   :  { %v1256_v22 = vmax.f32 %v1254_v43, %v1255_v39 }
 0x58b   :  { %v1233_v7 = vmax.f32 %v1225_v10, 0.0 }
 0x58c   :  { %v1183_v37 = vpop.permute.xlu0 %1182  ;;  %v1193_v0 = vpop.permute.xlu1 %1192  ;;  %v1257_v11 = vrot.slane %v1256_v22, 2 }
 0x58d   :  { %v1208_v36 = vmul.f32 %v1183_v37, %v1072_v62  ;;  %v1198_v14 = vpop.permute.xlu2 %1197  ;;  %v1210_v35 = vmul.f32 %v1193_v0, %v1074_v44  ;;  %v1241_v45 = vadd.f32 %v1233_v7, %v2537_v31  ;;  %v1277_v44 = vmax.f32 %v1275_v53, %v1276_v54  ;;  %v2151_v37 = vld [vmem:[%s3012_s2 + $0x58] sm:$0xff] }
 0x58e   :  { %v1211_v16 = vmul.f32 %v1198_v14, %v1075_v4  ;;  %v1258_v10 = vmax.f32 %v1256_v22, %v1257_v11  ;;  %1430 = vmatpush.bf16.msra.mxu0 %v2151_v37  ;;  %v1251_v14 = vmax.f32 %v1249_v50, %v1250_v57 }
 0x58f   :  { %v1217_v34 = vmul.f32 %v2753_v9, %v1208_v36  ;;  %v1219_v33 = vmul.f32 %v2753_v9, %v1210_v35  ;;  %v1261_v21 = vsel %vm234_vm2, %v1241_v45, -inf }
 0x590   :  { %v1220_v38 = vmul.f32 %v2753_v9, %v1211_v16  ;;  %v1262_v30 = vrot.slane %v1261_v21, 4  ;;  %v1259_v16 = vrot.slane %v1258_v10, 1 }
 0x591   :  { %v1226_v20 = vadd.f32 %v2757_v51, %v1217_v34  ;;  %v1228_v24 = vadd.f32 %v2757_v51, %v1219_v33  ;;  %v2150_v34 = vld [vmem:[%s3012_s2 + $0x50] sm:$0xff] }
 0x592   :  { %v2787_v29 = vadd.f32 %v2757_v51, %v1220_v38  ;;  %v1263_v2 = vmax.f32 %v1261_v21, %v1262_v30  ;;  %1431 = vmatpush.bf16.msra.mxu0 %v2150_v34 }
 0x593   :  { %v1234_v13 = vmax.f32 %v1226_v20, 0.0  ;;  %v1236_v49 = vmax.f32 %v1228_v24, 0.0 }
 0x594   :  { %v1237_v52 = vmax.f32 %v2787_v29, 0.0  ;;  %v1264_v42 = vrot.slane %v1263_v2, 2 }
 0x595   :  { %v1321_v23 = vpack.c.bf16 %v1234_v13, %v1233_v7  ;;  %v1242_v17 = vadd.f32 %v1234_v13, %v2535_v12  ;;  %v1244_v15 = vadd.f32 %v1236_v49, %v2626_v1  ;;  %v1322_v61 = vpack.c.bf16 %v1236_v49, %v1235_v40  ;;  %v1067_v6 = vpop.permute.xlu0 %1066 }
 0x596   :  { %v1245_v32 = vadd.f32 %v1237_v52, %v2598_v5  ;;  %v1265_v36 = vmax.f32 %v1263_v2, %v1264_v42  ;;  %v1278_v7 = vrot.slane %v1277_v44, 2  ;;  %v1076_v28 = vsub.f32 %v2675_v27, %v1067_v6 }
 0x597   :  { %2120 = vmatmul.msk.bf16.gmra.mxu2 %vm234_vm2, %v1321_v23  ;;  %v1268_v55 = vsel %vm234_vm2, %v1242_v17, -inf  ;;  %v1282_v47 = vsel %vm234_vm2, %v1244_v15, -inf  ;;  %v1252_v13 = vrot.slane %v1251_v14, 1  ;;  %v1260_v17 = vmax.f32 %v1258_v10, %v1259_v16 }
 0x598   :  { %v1269_v25 = vrot.slane %v1268_v55, 4  ;;  %v1289_v58 = vsel %vm234_vm2, %v1245_v32, -inf  ;;  %v1283_v62 = vrot.slane %v1282_v47, 4  ;;  %v1266_v20 = vrot.slane %v1265_v36, 1 }
 0x599   :  { %v1290_v0 = vrot.slane %v1289_v58, 4  ;;  %v1279_v38 = vmax.f32 %v1277_v44, %v1278_v7  ;;  %v1253_v48 = vmax.f32 %v1251_v14, %v1252_v13  ;;  %v1304_v19 = vmax.f32 %v1260_v17, 0.0 }
 0x59a   :  { %v1270_v56 = vmax.f32 %v1268_v55, %v1269_v25  ;;  %v1284_v4 = vmax.f32 %v1282_v47, %v1283_v62  ;;  %v1267_v24 = vmax.f32 %v1265_v36, %v1266_v20 }
 0x59b   :  { %v1291_v33 = vmax.f32 %v1289_v58, %v1290_v0  ;;  %v1280_v55 = vrot.slane %v1279_v38, 1  ;;  %v1303_v30 = vmax.f32 %v1253_v48, 0.0  ;;  %v1378_v2 = vpack.c.bf16 %v1304_v19, %v1304_v19 }
 0x59c   :  { %v1271_v59 = vrot.slane %v1270_v56, 2  ;;  %v1285_v18 = vrot.slane %v1284_v4, 2  ;;  %v1305_v27 = vmax.f32 %v1267_v24, 0.0 }
 0x59d   :  { %v1292_v40 = vrot.slane %v1291_v33, 2  ;;  %v1281_v53 = vmax.f32 %v1279_v38, %v1280_v55  ;;  %v1377_v54 = vpack.c.bf16 %v1303_v30, %v1303_v30  ;;  %v1394_v42 = vunpack.c.l.b16 %v1378_v2 }
 0x59e   :  { %v1272_v35 = vmax.f32 %v1270_v56, %v1271_v59  ;;  %v1286_v29 = vmax.f32 %v1284_v4, %v1285_v18  ;;  %v1379_v32 = vpack.c.bf16 %v1305_v27, %v1305_v27 }
 0x59f   :  { %v1293_v39 = vmax.f32 %v1291_v33, %v1292_v40  ;;  %v1307_v57 = vmax.f32 %v1281_v53, 0.0 }
 0x5a0   :  { %v1273_v8 = vrot.slane %v1272_v35, 1  ;;  %v1287_v15 = vrot.slane %v1286_v29, 1  ;;  %v1395_v59 = vunpack.c.l.b16 %v1379_v32 }
 0x5a1   :  { %v1381_v10 = vpack.c.bf16 %v1307_v57, %v1307_v57 }
 0x5a2   :  { %v1274_v21 = vmax.f32 %v1272_v35, %v1273_v8  ;;  %v1288_v47 = vmax.f32 %v1286_v29, %v1287_v15 }
 0x5a3   :  { %v1397_v7 = vunpack.c.l.b16 %v1381_v10 }
 0x5a4   :  { %v1306_v25 = vmax.f32 %v1274_v21, 0.0  ;;  %v1308_v37 = vmax.f32 %v1288_v47, 0.0 }
 0x5a6   :  { %v1382_v6 = vpack.c.bf16 %v1308_v37, %v1308_v37 }
 0x5a7   :  { %2121 = vmatmul.msk.bf16.gmra.mxu2 %vm234_vm2, %v1322_v61  ;;  %v1393_v61 = vunpack.c.l.b16 %v1377_v54 }
 0x5a9   :  { %v1401_v36 = vsel %vm776_vm13, %v1394_v42, %v1393_v61 }
 0x5aa   :  { %v1402_v14 = vsel %vm778_vm14, %v1395_v59, %v1401_v36 }
 0x5ad   :  { %v1203_v45 = vpop.permute.xlu1 %1202 }
 0x5ae   :  { %v1212_v23 = vmul.f32 %v1203_v45, %v1076_v28  ;;  %v1398_v28 = vunpack.c.l.b16 %v1382_v6 }
 0x5b0   :  { %v1221_v43 = vmul.f32 %v2753_v9, %v1212_v23  ;;  %v1294_v9 = vrot.slane %v1293_v39, 1 }
 0x5b2   :  { %v1230_v49 = vadd.f32 %v2757_v51, %v1221_v43  ;;  %v1380_v51 = vpack.c.bf16 %v1306_v25, %v1306_v25  ;;  %v1295_v62 = vmax.f32 %v1293_v39, %v1294_v9 }
 0x5b4   :  { %v1238_v41 = vmax.f32 %v1230_v49, 0.0  ;;  %v1396_v44 = vunpack.c.l.b16 %v1380_v51  ;;  %v1309_v35 = vmax.f32 %v1295_v62, 0.0  ;;  %v2234_v49 = vld [vmem:[%s3013_s3] sm:$0x7] }
 0x5b5   :  { %v1469_v19 = vperm.slane %v2234_v49, 2 }
 0x5b6   :  { %v1246_v22 = vadd.f32 %v1238_v41, %v2619_v63  ;;  %v1323_v50 = vpack.c.bf16 %v1238_v41, %v1237_v52  ;;  %v1403_v4 = vsel %vm780_vm15, %v1396_v44, %v1402_v14  ;;  %v1383_v20 = vpack.c.bf16 %v1309_v35, %v1309_v35 }
 0x5b7   :  { %v1404_v33 = vsel %vm782_vm1, %v1397_v7, %v1403_v4 }
 0x5b8   :  { %v1296_v56 = vsel %vm234_vm2, %v1246_v22, -inf  ;;  %2122 = vmatmul.msk.bf16.gmra.mxu2 %vm234_vm2, %v1323_v50  ;;  %v1405_v18 = vsel %vm784_vm3, %v1398_v28, %v1404_v33  ;;  %v1399_v45 = vunpack.c.l.b16 %v1383_v20 }
 0x5b9   :  { %v1297_v11 = vrot.slane %v1296_v56, 4 }
 0x5ba   :  { %v1406_v23 = vsel %vm786_vm4, %v1399_v45, %v1405_v18 }
 0x5bb   :  { %v1298_v58 = vmax.f32 %v1296_v56, %v1297_v11 }
 0x5bd   :  { %v1299_v52 = vrot.slane %v1298_v58, 2 }
 0x5bf   :  { %v1300_v0 = vmax.f32 %v1298_v58, %v1299_v52 }
 0x5c1   :  { %v1301_v34 = vrot.slane %v1300_v0, 1 }
 0x5c3   :  { %v1302_v16 = vmax.f32 %v1300_v0, %v1301_v34 }
 0x5c5   :  { %v1310_v13 = vmax.f32 %v1302_v16, 0.0 }
 0x5c7   :  { %v1384_v8 = vpack.c.bf16 %v1310_v13, %v1310_v13 }
 0x5c9   :  { %v1400_v38 = vunpack.c.l.b16 %v1384_v8 }
 0x5cb   :  { %v1407_v17 = vsel %vm3019_vm12, %v1400_v38, %v1406_v23 }
 0x5cc   :  { %v1408_v24 = vpack.c.b16 %v1407_v17, %v1407_v17 }
 0x5ce   :  { %2131 = vmatmul.msk.bf16.vlgmr.msra.gmra.mxu0 %vm234_vm2, %v1408_v24 }
 0x60a   :  { %v1357_v40 = vpop.f32.mrf.mxu2 }
 0x612   :  { %v1359_v43 = vpop.f32.mrf.mxu2 }
 0x61a   :  { %v1362_v48 = vpop.f32.mrf.mxu2 }
 0x622   :  { %v1364_v21 = vpop.f32.mrf.mxu2 }
 0x62a   :  { %v1367_v29 = vpop.f32.mrf.mxu2 }
 0x632   :  { %v1369_v55 = vpop.f32.mrf.mxu2 }
 0x63b   :  { %v1372_v11 = vpop.f32.mrf.mxu2 }
 0x643   :  { %v1374_v16 = vpop.f32.mrf.mxu2 }
 0x64b   :  { %v1433_v27 = vpop.f32.mrf.mxu0 }
 0x64c   :  { %v1445_v39 = vperm.slane %v1433_v27, 0  ;;  %v1439_v41 = vrot.slane %v1433_v27, 2  ;;  %v1438_v30 = vrot.slane %v1433_v27, 1  ;;  %v1440_v25 = vrot.slane %v1433_v27, 3 }
 0x64d   :  { %v1442_v15 = vrot.slane %v1433_v27, 5  ;;  %v1441_v53 = vrot.slane %v1433_v27, 4  ;;  %v1443_v57 = vrot.slane %v1433_v27, 6  ;;  %v1444_v44 = vrot.slane %v1433_v27, 7 }
 0x64e   :  { %v1461_v22 = vadd.f32 %v1445_v39, %v1357_v40  ;;  %v1447_v50 = vperm.slane %v1439_v41, 0  ;;  %v1446_v2 = vperm.slane %v1438_v30, 0  ;;  %v1448_v32 = vperm.slane %v1440_v25, 0 }
 0x64f   :  { %v1450_v9 = vperm.slane %v1442_v15, 0  ;;  %v1449_v47 = vperm.slane %v1441_v53, 0  ;;  %v1451_v14 = vperm.slane %v1443_v57, 0  ;;  %v1452_v6 = vperm.slane %v1444_v44, 0 }
 0x650   :  { %v2821_v56 = vadd.f32 %v1469_v19, %v1461_v22  ;;  %v1463_v54 = vadd.f32 %v1447_v50, %v1362_v48  ;;  %v1462_v51 = vadd.f32 %v1446_v2, %v1359_v43  ;;  %v1464_v62 = vadd.f32 %v1448_v32, %v1364_v21 }
 0x651   :  { %v1466_v10 = vadd.f32 %v1450_v9, %v1369_v55  ;;  %v1465_v36 = vadd.f32 %v1449_v47, %v1367_v29  ;;  %v1467_v7 = vadd.f32 %v1451_v14, %v1372_v11  ;;  %v1468_v28 = vadd.f32 %v1452_v6, %v1374_v16 }
 0x652   :  { %v1478_v42 = vmul.f32 %v2821_v56, %v2821_v56  ;;  %v2825_v58 = vadd.f32 %v1469_v19, %v1463_v54  ;;  %v2827_v59 = vadd.f32 %v1469_v19, %v1462_v51  ;;  %v2836_v0 = vadd.f32 %v1469_v19, %v1464_v62 }
 0x653   :  { %v1435_v61 = vpop.f32.mrf.mxu0  ;;  %v2838_v35 = vadd.f32 %v1469_v19, %v1466_v10  ;;  %v2840_v4 = vadd.f32 %v1469_v19, %v1465_v36  ;;  %v2851_v13 = vadd.f32 %v1469_v19, %v1467_v7  ;;  %v2853_v8 = vadd.f32 %v1469_v19, %v1468_v28 }
 0x654   :  { %1494 = vrot.lane.b32.xlu2 %v1478_v42, %s2263_s23  ;;  %v1480_v37 = vmul.f32 %v2825_v58, %v2825_v58  ;;  %v1479_v52 = vmul.f32 %v2827_v59, %v2827_v59  ;;  %v1481_v34 = vmul.f32 %v2836_v0, %v2836_v0 }
 0x655   :  { %v1483_v20 = vmul.f32 %v2838_v35, %v2838_v35  ;;  %v1482_v33 = vmul.f32 %v2840_v4, %v2840_v4  ;;  %v1484_v18 = vmul.f32 %v2851_v13, %v2851_v13  ;;  %v1485_v45 = vmul.f32 %v2853_v8, %v2853_v8 }
 0x656   :  { %1498 = vrot.lane.b32.xlu1 %v1480_v37, %s2263_s23  ;;  %1496 = vrot.lane.b32.xlu0 %v1479_v52, %s2263_s23 }
 0x65c   :  { %1500 = vrot.lane.b32.xlu2 %v1481_v34, %s2263_s23 }
 0x65e   :  { %1504 = vrot.lane.b32.xlu1 %v1483_v20, %s2263_s23  ;;  %1502 = vrot.lane.b32.xlu0 %v1482_v33, %s2263_s23 }
 0x664   :  { %1506 = vrot.lane.b32.xlu2 %v1484_v18, %s2263_s23 }
 0x666   :  { %1508 = vrot.lane.b32.xlu0 %v1485_v45, %s2263_s23 }
 0x6ae   :  { %v1495_v38 = vpop.permute.xlu2 %1494 }
 0x6af   :  { %v1518_v23 = vsel %vm234_vm2, %v2821_v56, %v1495_v38 }
 0x6b0   :  { %2132 = vmatmul.msk.f32.vlgmr.msrb.gmra.mxu1 %vm3020_vm6, %v1518_v23 }
 0x6b6   :  { %v1501_v48 = vpop.permute.xlu2 %1500 }
 0x6b7   :  { %v1521_v21 = vsel %vm234_vm2, %v2836_v0, %v1501_v48 }
 0x6be   :  { %v1507_v27 = vpop.permute.xlu2 %1506 }
 0x6bf   :  { %v1524_v39 = vsel %vm234_vm2, %v2851_v13, %v1507_v27 }
 0x6c8   :  { %v1497_v17 = vpop.permute.xlu0 %1496  ;;  %v1499_v40 = vpop.permute.xlu1 %1498 }
 0x6c9   :  { %v1519_v24 = vsel %vm234_vm2, %v2827_v59, %v1497_v17  ;;  %v1520_v43 = vsel %vm234_vm2, %v2825_v58, %v1499_v40 }
 0x6ca   :  { %2133 = vmatmul.msk.f32.gmra.mxu1 %vm3021_vm7, %v1519_v24 }
 0x6d0   :  { %v1503_v29 = vpop.permute.xlu0 %1502  ;;  %v1505_v49 = vpop.permute.xlu1 %1504 }
 0x6d1   :  { %v1522_v55 = vsel %vm234_vm2, %v2840_v4, %v1503_v29  ;;  %v1523_v19 = vsel %vm234_vm2, %v2838_v35, %v1505_v49 }
 0x6d2   :  { %2134 = vmatmul.msk.f32.gmra.mxu1 %vm3022_vm0, %v1520_v43 }
 0x6d8   :  { %v1509_v41 = vpop.permute.xlu0 %1508 }
 0x6d9   :  { %v1525_v30 = vsel %vm234_vm2, %v2853_v8, %v1509_v41 }
 0x6da   :  { %2135 = vmatmul.msk.f32.gmra.mxu1 %vm3023_vm5, %v1521_v21 }
 0x6e2   :  { %2136 = vmatmul.msk.f32.gmra.mxu1 %vm3024_vm8, %v1522_v55 }
 0x6ea   :  { %2137 = vmatmul.msk.f32.gmra.mxu1 %vm3025_vm9, %v1523_v19 }
 0x6f2   :  { %2138 = vmatmul.msk.f32.gmra.mxu1 %vm3026_vm10, %v1524_v39 }
 0x6fa   :  { %2139 = vmatmul.msk.f32.gmra.mxu1 %vm3027_vm11, %v1525_v30 }
 0x72d   :  { %v1567_v25 = vpop.f32.mrf.mxu1 }
 0x72e   :  { %v1591_v15 = vmul.f32 0.03125, %v1567_v25 }
 0x730   :  { %v1599_v53 = vmul.f32 %v1591_v15, %v1591_v15 }
 0x732   :  { %1615 = vrot.lane.b32.xlu1 %v1599_v53, %s2265_s0 }
 0x747   :  { %v1570_v22 = vpop.f32.mrf.mxu1 }
 0x748   :  { %v1592_v50 = vmul.f32 0.03125, %v1570_v22 }
 0x74a   :  { %v1600_v2 = vmul.f32 %v1592_v50, %v1592_v50 }
 0x74c   :  { %1617 = vrot.lane.b32.xlu2 %v1600_v2, %s2265_s0 }
 0x74f   :  { %v1573_v32 = vpop.f32.mrf.mxu1 }
 0x750   :  { %v2887_v9 = vmul.f32 0.03125, %v1573_v32 }
 0x752   :  { %v1601_v54 = vmul.f32 %v2887_v9, %v2887_v9 }
 0x754   :  { %1619 = vrot.lane.b32.xlu0 %v1601_v54, %s2265_s0 }
 0x757   :  { %v1576_v51 = vpop.f32.mrf.mxu1 }
 0x758   :  { %v2892_v47 = vmul.f32 0.03125, %v1576_v51 }
 0x75a   :  { %v1602_v11 = vmul.f32 %v2892_v47, %v2892_v47 }
 0x75c   :  { %1621 = vrot.lane.b32.xlu1 %v1602_v11, %s2265_s0 }
 0x75f   :  { %v1579_v57 = vpop.f32.mrf.mxu1 }
 0x760   :  { %v1595_v42 = vmul.f32 0.03125, %v1579_v57 }
 0x762   :  { %v1603_v62 = vmul.f32 %v1595_v42, %v1595_v42 }
 0x764   :  { %1623 = vrot.lane.b32.xlu2 %v1603_v62, %s2265_s0 }
 0x767   :  { %v1582_v61 = vpop.f32.mrf.mxu1 }
 0x768   :  { %v2898_v44 = vmul.f32 0.03125, %v1582_v61 }
 0x76a   :  { %v1604_v37 = vmul.f32 %v2898_v44, %v2898_v44 }
 0x76c   :  { %1625 = vrot.lane.b32.xlu0 %v1604_v37, %s2265_s0 }
 0x76f   :  { %v1585_v52 = vpop.f32.mrf.mxu1 }
 0x770   :  { %v2903_v10 = vmul.f32 0.03125, %v1585_v52 }
 0x772   :  { %v1605_v36 = vmul.f32 %v2903_v10, %v2903_v10 }
 0x774   :  { %1649 = vperm.xlu0 %2179, %v1591_v15   ;;  %1627 = vrot.lane.b32.xlu1 %v1605_v36, %s2265_s0 }
 0x777   :  { %v1588_v14 = vpop.f32.mrf.mxu1 }
 0x778   :  { %v2908_v6 = vmul.f32 0.03125, %v1588_v14 }
 0x77a   :  { %v1606_v34 = vmul.f32 %v2908_v6, %v2908_v6 }
 0x77c   :  { %1664 = vperm.xlu0 %2179, %v2892_v47   ;;  %1654 = vperm.xlu1 %2181, %v1592_v50  }
 0x77d   :  { %1629 = vrot.lane.b32.xlu2 %v1606_v34, %s2265_s0 }
 0x784   :  { %1669 = vperm.xlu0 %2179, %v1595_v42   ;;  %1679 = vperm.xlu1 %2181, %v2903_v10  }
 0x785   :  { %1659 = vperm.xlu2 %2182, %v2887_v9  }
 0x78c   :  { %1684 = vperm.xlu1 %2181, %v2908_v6   ;;  %2185 = vset.pattern.permute.xlu0 %v2267_v46 }
 0x78d   :  { %1674 = vperm.xlu2 %2182, %v2898_v44  }
 0x794   :  { %2183 = vset.pattern.permute.xlu1 %v2267_v46 }
 0x795   :  { %2184 = vset.pattern.permute.xlu2 %v2267_v46 }
 0x7a4   :  { %v1616_v7 = vpop.permute.xlu1 %1615 }
 0x7a5   :  { %v1639_v16 = vsub.f32 %v1591_v15, %v1616_v7 }
 0x7a6   :  { %v1618_v20 = vpop.permute.xlu2 %1617 }
 0x7a7   :  { %v1695_v33 = vadd.f32 1e-05, %v1639_v16  ;;  %v1640_v28 = vsub.f32 %v1592_v50, %v1618_v20 }
 0x7a9   :  { %2218 = vrsqrt.f32 %v1695_v33  ;;  %v1696_v18 = vadd.f32 1e-05, %v1640_v28  ;;  %vm1709_vm6 = vweird.f32 %v1695_v33 }
 0x7ab   :  { %2220 = vrsqrt.f32 %v1696_v18  ;;  %vm1719_vm5 = vweird.f32 %v1696_v18 }
 0x7af   :  { %v2219_v45 = vpop.eup %2218 }
 0x7b0   :  { %v1704_v38 = vmul.f32 %v2219_v45, %v1695_v33  ;;  %vm1710_vm12 = vweird.f32 %v2219_v45 }
 0x7b1   :  { %v2221_v23 = vpop.eup %2220  ;;  %vm1711_vm0 = vmor %vm1709_vm6, %vm1710_vm12 }
 0x7b2   :  { %v1705_v17 = vmul.f32 %v2219_v45, %v1704_v38  ;;  %v1714_v24 = vmul.f32 %v2221_v23, %v1696_v18  ;;  %vm1720_vm7 = vweird.f32 %v2221_v23 }
 0x7b3   :  { %vm1721_vm8 = vmor %vm1719_vm5, %vm1720_vm7 }
 0x7b4   :  { %v1706_v40 = vmul.f32 0.5, %v1705_v17  ;;  %v1715_v43 = vmul.f32 %v2221_v23, %v1714_v24 }
 0x7b6   :  { %v1716_v48 = vmul.f32 0.5, %v1715_v43  ;;  %v1707_v21 = vsub.f32 1.5, %v1706_v40 }
 0x7b8   :  { %v1708_v29 = vmul.f32 %v2219_v45, %v1707_v21  ;;  %v1717_v46 = vsub.f32 1.5, %v1716_v48 }
 0x7ba   :  { %v1712_v55 = vsel %vm1711_vm0, %v2219_v45, %v1708_v29  ;;  %v1718_v49 = vmul.f32 %v2221_v23, %v1717_v46 }
 0x7bb   :  { %1785 = vperm.xlu1 %2183, %v1712_v55  }
 0x7bc   :  { %v1722_v19 = vsel %vm1721_vm8, %v2221_v23, %v1718_v49 }
 0x7bd   :  { %1790 = vperm.xlu2 %2184, %v1722_v19  }
 0x7be   :  { %v1624_v27 = vpop.permute.xlu2 %1623 }
 0x7bf   :  { %v1643_v39 = vsub.f32 %v1595_v42, %v1624_v27 }
 0x7c1   :  { %v1699_v41 = vadd.f32 1e-05, %v1643_v39 }
 0x7c3   :  { %2222 = vrsqrt.f32 %v1699_v41  ;;  %vm1749_vm10 = vweird.f32 %v1699_v41 }
 0x7c6   :  { %v1620_v30 = vpop.permute.xlu0 %1619 }
 0x7c7   :  { %v1641_v25 = vsub.f32 %v2887_v9, %v1620_v30 }
 0x7c9   :  { %v2223_v15 = vpop.eup %2222  ;;  %v1697_v53 = vadd.f32 1e-05, %v1641_v25 }
 0x7ca   :  { %v1744_v22 = vmul.f32 %v2223_v15, %v1699_v41  ;;  %vm1750_vm9 = vweird.f32 %v2223_v15 }
 0x7cb   :  { %2224 = vrsqrt.f32 %v1697_v53  ;;  %vm1751_vm11 = vmor %vm1749_vm10, %vm1750_vm9  ;;  %vm1729_vm6 = vweird.f32 %v1697_v53 }
 0x7cc   :  { %v1745_v50 = vmul.f32 %v2223_v15, %v1744_v22 }
 0x7ce   :  { %v1746_v2 = vmul.f32 0.5, %v1745_v50  ;;  %v1622_v32 = vpop.permute.xlu1 %1621 }
 0x7cf   :  { %v1642_v54 = vsub.f32 %v2892_v47, %v1622_v32 }
 0x7d0   :  { %v1747_v51 = vsub.f32 1.5, %v1746_v2 }
 0x7d1   :  { %v2225_v11 = vpop.eup %2224  ;;  %v1698_v57 = vadd.f32 1e-05, %v1642_v54 }
 0x7d2   :  { %v1724_v62 = vmul.f32 %v2225_v11, %v1697_v53  ;;  %v1748_v42 = vmul.f32 %v2223_v15, %v1747_v51  ;;  %vm1730_vm12 = vweird.f32 %v2225_v11 }
 0x7d3   :  { %2226 = vrsqrt.f32 %v1698_v57  ;;  %vm1731_vm7 = vmor %vm1729_vm6, %vm1730_vm12  ;;  %vm1739_vm5 = vweird.f32 %v1698_v57 }
 0x7d4   :  { %v1725_v61 = vmul.f32 %v2225_v11, %v1724_v62  ;;  %v1752_v9 = vsel %vm1751_vm11, %v2223_v15, %v1748_v42 }
 0x7d5   :  { %1805 = vperm.xlu2 %2184, %v1752_v9  }
 0x7d6   :  { %v1726_v37 = vmul.f32 0.5, %v1725_v61  ;;  %v2235_v61 = vld [vmem:[%s3014_s4] sm:$0x7]  ;;  %s2268_s4 = smov [#allocation2]  }
 0x7d7   :  { %v1630_v52 = vpop.permute.xlu2 %1629  ;;  %v2930_v9 = vperm.slane %v2235_v61, 2 }
 0x7d8   :  { %v1646_v36 = vsub.f32 %v2908_v6, %v1630_v52  ;;  %v1727_v14 = vsub.f32 1.5, %v1726_v37 }
 0x7d9   :  { %v2227_v34 = vpop.eup %2226 }
 0x7da   :  { %v1734_v47 = vmul.f32 %v2227_v34, %v1698_v57  ;;  %v1702_v7 = vadd.f32 1e-05, %v1646_v36  ;;  %v1728_v16 = vmul.f32 %v2225_v11, %v1727_v14  ;;  %vm1740_vm0 = vweird.f32 %v2227_v34  ;;  %v2236_v36 = vld [vmem:[%s3015_s5] sm:$0x7]  ;;  %s2026_s5 = sshll.u32 %s2268_s4, 4  ;;  %s2027_s5 = int_to_ptr.vmem [resolvable:$true] %s2026_s5 }
 0x7db   :  { %vm1741_vm8 = vmor %vm1739_vm5, %vm1740_vm0  ;;  %v2937_v14 = vperm.slane %v2236_v36, 2 }
 0x7dc   :  { %v1735_v20 = vmul.f32 %v2227_v34, %v1734_v47  ;;  %2228 = vrsqrt.f32 %v1702_v7  ;;  %v1732_v33 = vsel %vm1731_vm7, %v2225_v11, %v1728_v16  ;;  %vm1779_vm10 = vweird.f32 %v1702_v7 }
 0x7dd   :  { %1795 = vperm.xlu1 %2183, %v1732_v33  }
 0x7de   :  { %v1736_v28 = vmul.f32 0.5, %v1735_v20  ;;  %v1626_v18 = vpop.permute.xlu0 %1625 }
 0x7df   :  { %v1644_v45 = vsub.f32 %v2898_v44, %v1626_v18  ;;  %v1660_v51 = vpop.permute.xlu2 %1659 }
 0x7e0   :  { %v1737_v38 = vsub.f32 1.5, %v1736_v28 }
 0x7e1   :  { %v1700_v23 = vadd.f32 1e-05, %v1644_v45 }
 0x7e2   :  { %v2229_v6 = vpop.eup %2228  ;;  %v1738_v17 = vmul.f32 %v2227_v34, %v1737_v38 }
 0x7e3   :  { %v1774_v24 = vmul.f32 %v2229_v6, %v1702_v7  ;;  %2230 = vrsqrt.f32 %v1700_v23  ;;  %vm1780_vm9 = vweird.f32 %v2229_v6  ;;  %vm1759_vm6 = vweird.f32 %v1700_v23 }
 0x7e4   :  { %v1742_v40 = vsel %vm1741_vm8, %v2227_v34, %v1738_v17  ;;  %vm1781_vm11 = vmor %vm1779_vm10, %vm1780_vm9 }
 0x7e5   :  { %v1775_v43 = vmul.f32 %v2229_v6, %v1774_v24  ;;  %1800 = vperm.xlu0 %2185, %v1742_v40  }
 0x7e6   :  { %v1628_v48 = vpop.permute.xlu1 %1627  ;;  %v1650_v16 = vpop.permute.xlu0 %1649 }
 0x7e7   :  { %v1776_v21 = vmul.f32 0.5, %v1775_v43  ;;  %v1645_v29 = vsub.f32 %v2903_v10, %v1628_v48  ;;  %v1675_v11 = vpop.permute.xlu2 %1674  ;;  %v1687_v33 = vsub.f32 %v2821_v56, %v1650_v16 }
 0x7e9   :  { %v2231_v46 = vpop.eup %2230  ;;  %v1701_v55 = vadd.f32 1e-05, %v1645_v29  ;;  %v1777_v49 = vsub.f32 1.5, %v1776_v21 }
 0x7ea   :  { %v1754_v44 = vmul.f32 %v2231_v46, %v1700_v23  ;;  %vm1760_vm12 = vweird.f32 %v2231_v46 }
 0x7eb   :  { %2232 = vrsqrt.f32 %v1701_v55  ;;  %v1778_v19 = vmul.f32 %v2229_v6, %v1777_v49  ;;  %vm1761_vm7 = vmor %vm1759_vm6, %vm1760_vm12  ;;  %vm1769_vm5 = vweird.f32 %v1701_v55 }
 0x7ec   :  { %v1755_v27 = vmul.f32 %v2231_v46, %v1754_v44 }
 0x7ed   :  { %v1782_v39 = vsel %vm1781_vm11, %v2229_v6, %v1778_v19 }
 0x7ee   :  { %v1756_v41 = vmul.f32 0.5, %v1755_v27  ;;  %1820 = vperm.xlu1 %2183, %v1782_v39   ;;  %v1655_v57 = vpop.permute.xlu1 %1654  ;;  %v1665_v43 = vpop.permute.xlu0 %1664 }
 0x7ef   :  { %v1688_v42 = vsub.f32 %v2827_v59, %v1655_v57 }
 0x7f0   :  { %v1757_v30 = vsub.f32 1.5, %v1756_v41 }
 0x7f1   :  { %v2233_v25 = vpop.eup %2232 }
 0x7f2   :  { %v1764_v15 = vmul.f32 %v2233_v25, %v1701_v55  ;;  %v1758_v53 = vmul.f32 %v2231_v46, %v1757_v30  ;;  %vm1770_vm0 = vweird.f32 %v2233_v25 }
 0x7f3   :  { %vm1771_vm8 = vmor %vm1769_vm5, %vm1770_vm0 }
 0x7f4   :  { %v1765_v10 = vmul.f32 %v2233_v25, %v1764_v15  ;;  %v1762_v22 = vsel %vm1761_vm7, %v2231_v46, %v1758_v53  ;;  %v1689_v53 = vsub.f32 %v2825_v58, %v1660_v51 }
 0x7f5   :  { %1810 = vperm.xlu2 %2184, %v1762_v22  }
 0x7f6   :  { %v1766_v50 = vmul.f32 0.5, %v1765_v10  ;;  %v2932_v52 = vpop.permute.xlu1 %1679  ;;  %v1670_v44 = vpop.permute.xlu0 %1669  ;;  %v1692_v10 = vsub.f32 %v2838_v35, %v1675_v11  ;;  %v1690_v35 = vsub.f32 %v2836_v0, %v1665_v43 }
 0x7f7   :  { %v1691_v30 = vsub.f32 %v2840_v4, %v1670_v44 }
 0x7f8   :  { %v1767_v2 = vsub.f32 1.5, %v1766_v50 }
 0x7fa   :  { %v1768_v32 = vmul.f32 %v2233_v25, %v1767_v2 }
 0x7fc   :  { %v1772_v54 = vsel %vm1771_vm8, %v2233_v25, %v1768_v32 }
 0x7fd   :  { %1815 = vperm.xlu0 %2185, %v1772_v54  }
 0x7fe   :  { %v2941_v59 = vpop.permute.xlu1 %1684 }
 0x817   :  { %v1791_v62 = vpop.permute.xlu2 %1790 }
 0x818   :  { %v1824_v37 = vmul.f32 %v1791_v62, %v1688_v42 }
 0x81a   :  { %v1833_v34 = vmul.f32 %v2930_v9, %v1824_v37 }
 0x81c   :  { %v1842_v47 = vadd.f32 %v2937_v14, %v1833_v34 }
 0x81e   :  { %v1850_v7 = vmax.f32 %v1842_v47, 0.0 }
 0x820   :  { %v1936_v20 = vsel %vm234_vm2, %v1850_v7, -inf }
 0x821   :  { %v1937_v28 = vrot.slane %v1936_v20, 4 }
 0x823   :  { %v1938_v23 = vmax.f32 %v1936_v20, %v1937_v28 }
 0x825   :  { %v1939_v24 = vrot.slane %v1938_v23, 2 }
 0x827   :  { %v1940_v21 = vmax.f32 %v1938_v23, %v1939_v24 }
 0x829   :  { %v1941_v55 = vrot.slane %v1940_v21, 1 }
 0x82b   :  { %v1942_v19 = vmax.f32 %v1940_v21, %v1941_v55 }
 0x82d   :  { %v1786_v18 = vpop.permute.xlu1 %1785 }
 0x82e   :  { %v1823_v45 = vmul.f32 %v1786_v18, %v1687_v33 }
 0x82f   :  { %v1806_v41 = vpop.permute.xlu2 %1805 }
 0x830   :  { %v1832_v38 = vmul.f32 %v2930_v9, %v1823_v45  ;;  %v1827_v25 = vmul.f32 %v1806_v41, %v1691_v30 }
 0x832   :  { %v1841_v6 = vadd.f32 %v2937_v14, %v1832_v38  ;;  %v1836_v15 = vmul.f32 %v2930_v9, %v1827_v25  ;;  %v1858_v38 = vadd.f32 %v1850_v7, %v2567_v60 }
 0x834   :  { %v1849_v17 = vmax.f32 %v1841_v6, 0.0  ;;  %v1845_v22 = vadd.f32 %v2937_v14, %v1836_v15 }
 0x836   :  { %v1929_v40 = vsel %vm234_vm2, %v1849_v17, -inf  ;;  %v1853_v57 = vmax.f32 %v1845_v22, 0.0  ;;  %v1857_v18 = vadd.f32 %v1849_v17, %v2528_v26  ;;  %v1872_v26 = vsel %vm234_vm2, %v1858_v38, -inf }
 0x837   :  { %v1930_v48 = vrot.slane %v1929_v40, 4  ;;  %v1873_v30 = vrot.slane %v1872_v26, 4 }
 0x838   :  { %v1957_v37 = vsel %vm234_vm2, %v1853_v57, -inf  ;;  %v1865_v21 = vsel %vm234_vm2, %v1857_v18, -inf  ;;  %v1861_v17 = vadd.f32 %v1853_v57, %v2575_v3 }
 0x839   :  { %v1931_v29 = vmax.f32 %v1929_v40, %v1930_v48  ;;  %v1958_v47 = vrot.slane %v1957_v37, 4  ;;  %v1694_v48 = vsub.f32 %v2853_v8, %v2941_v59  ;;  %v1866_v44 = vrot.slane %v1865_v21, 4 }
 0x83b   :  { %v1932_v46 = vrot.slane %v1931_v29, 2  ;;  %v1959_v23 = vmax.f32 %v1957_v37, %v1958_v47  ;;  %v1693_v47 = vsub.f32 %v2851_v13, %v2932_v52 }
 0x83d   :  { %v1933_v49 = vmax.f32 %v1931_v29, %v1932_v46  ;;  %v1960_v60 = vrot.slane %v1959_v23, 2 }
 0x83f   :  { %v1934_v56 = vrot.slane %v1933_v49, 1 }
 0x841   :  { %v1935_v27 = vmax.f32 %v1933_v49, %v1934_v56 }
 0x843   :  { %v1993_v39 = vsel %vm776_vm13, %v1942_v19, %v1935_v27 }
 0x84f   :  { %v1796_v50 = vpop.permute.xlu1 %1795  ;;  %v1811_v2 = vpop.permute.xlu2 %1810 }
 0x850   :  { %v1825_v32 = vmul.f32 %v1796_v50, %v1689_v53  ;;  %v1828_v54 = vmul.f32 %v1811_v2, %v1692_v10  ;;  %v1893_v53 = vsel %vm234_vm2, %v1861_v17, -inf  ;;  %v1961_v10 = vmax.f32 %v1959_v23, %v1960_v60 }
 0x851   :  { %v1867_v50 = vmax.f32 %v1865_v21, %v1866_v44 }
 0x852   :  { %v1834_v62 = vmul.f32 %v2930_v9, %v1825_v32  ;;  %v1837_v42 = vmul.f32 %v2930_v9, %v1828_v54  ;;  %v1962_v37 = vrot.slane %v1961_v10, 1 }
 0x854   :  { %v1843_v4 = vadd.f32 %v2937_v14, %v1834_v62  ;;  %v1846_v61 = vadd.f32 %v2937_v14, %v1837_v42  ;;  %v1874_v62 = vmax.f32 %v1872_v26, %v1873_v30 }
 0x856   :  { %v1851_v58 = vmax.f32 %v1843_v4, 0.0  ;;  %v1854_v51 = vmax.f32 %v1846_v61, 0.0  ;;  %v1894_v61 = vrot.slane %v1893_v53, 4 }
 0x857   :  { %v1801_v11 = vpop.permute.xlu0 %1800 }
 0x858   :  { %v1943_v36 = vsel %vm234_vm2, %v1851_v58, -inf  ;;  %v1964_v34 = vsel %vm234_vm2, %v1854_v51, -inf  ;;  %v1826_v20 = vmul.f32 %v1801_v11, %v1690_v35  ;;  %v1859_v0 = vadd.f32 %v1851_v58, %v2537_v31 }
 0x859   :  { %v1944_v16 = vrot.slane %v1943_v36, 4  ;;  %v1965_v28 = vrot.slane %v1964_v34, 4  ;;  %v1862_v2 = vadd.f32 %v1854_v51, %v2626_v1  ;;  %v1868_v35 = vrot.slane %v1867_v50, 2 }
 0x85a   :  { %v1835_v45 = vmul.f32 %v2930_v9, %v1826_v20  ;;  %v1879_v55 = vsel %vm234_vm2, %v1859_v0, -inf }
 0x85b   :  { %v1945_v33 = vmax.f32 %v1943_v36, %v1944_v16  ;;  %v1966_v43 = vmax.f32 %v1964_v34, %v1965_v28  ;;  %v1880_v25 = vrot.slane %v1879_v55, 4  ;;  %v1900_v11 = vsel %vm234_vm2, %v1862_v2, -inf }
 0x85c   :  { %v1844_v24 = vadd.f32 %v2937_v14, %v1835_v45  ;;  %v1963_v28 = vmax.f32 %v1961_v10, %v1962_v37  ;;  %v1901_v18 = vrot.slane %v1900_v11, 4  ;;  %v1869_v38 = vmax.f32 %v1867_v50, %v1868_v35 }
 0x85d   :  { %v1946_v6 = vrot.slane %v1945_v33, 2  ;;  %v1967_v8 = vrot.slane %v1966_v43, 2  ;;  %v1881_v42 = vmax.f32 %v1879_v55, %v1880_v25 }
 0x85e   :  { %v1852_v29 = vmax.f32 %v1844_v24, 0.0  ;;  %v1870_v17 = vrot.slane %v1869_v38, 1 }
 0x85f   :  { %v1947_v40 = vmax.f32 %v1945_v33, %v1946_v6  ;;  %v1968_v32 = vmax.f32 %v1966_v43, %v1967_v8  ;;  %v1882_v1 = vrot.slane %v1881_v42, 2  ;;  %v1875_v33 = vrot.slane %v1874_v62, 2 }
 0x860   :  { %v1821_v46 = vpop.permute.xlu1 %1820  ;;  %v1860_v31 = vadd.f32 %v1852_v29, %v2535_v12  ;;  %v1950_v49 = vsel %vm234_vm2, %v1852_v29, -inf  ;;  %v1902_v29 = vmax.f32 %v1900_v11, %v1901_v18 }
 0x861   :  { %v1948_v7 = vrot.slane %v1947_v40, 1  ;;  %v1830_v56 = vmul.f32 %v1821_v46, %v1694_v48  ;;  %v1951_v59 = vrot.slane %v1950_v49, 4  ;;  %v1969_v36 = vrot.slane %v1968_v32, 1 }
 0x862   :  { %v1886_v27 = vsel %vm234_vm2, %v1860_v31, -inf  ;;  %v1883_v52 = vmax.f32 %v1881_v42, %v1882_v1  ;;  %v1876_v21 = vmax.f32 %v1874_v62, %v1875_v33  ;;  %v1903_v44 = vrot.slane %v1902_v29, 2 }
 0x863   :  { %v1949_v19 = vmax.f32 %v1947_v40, %v1948_v7  ;;  %v1839_v41 = vmul.f32 %v2930_v9, %v1830_v56  ;;  %v1952_v3 = vmax.f32 %v1950_v49, %v1951_v59  ;;  %v1887_v12 = vrot.slane %v1886_v27, 4 }
 0x864   :  { %v1970_v23 = vmax.f32 %v1968_v32, %v1969_v36  ;;  %v1884_v49 = vrot.slane %v1883_v52, 1  ;;  %v1877_v56 = vrot.slane %v1876_v21, 1  ;;  %v1871_v59 = vmax.f32 %v1869_v38, %v1870_v17 }
 0x865   :  { %v1994_v15 = vsel %vm778_vm14, %v1949_v19, %v1993_v39  ;;  %v1848_v22 = vadd.f32 %v2937_v14, %v1839_v41  ;;  %v1953_v54 = vrot.slane %v1952_v3, 2  ;;  %v1888_v58 = vmax.f32 %v1886_v27, %v1887_v12 }
 0x866   :  { %v1904_v10 = vmax.f32 %v1902_v29, %v1903_v44  ;;  %v1921_v32 = vmax.f32 %v1871_v59, 0.0 }
 0x867   :  { %v1856_v57 = vmax.f32 %v1848_v22, 0.0  ;;  %v1954_v4 = vmax.f32 %v1952_v3, %v1953_v54  ;;  %v1889_v45 = vrot.slane %v1888_v58, 2 }
 0x868   :  { %v1905_v37 = vrot.slane %v1904_v10, 1 }
 0x869   :  { %v1864_v39 = vadd.f32 %v1856_v57, %v2619_v63  ;;  %v1955_v34 = vrot.slane %v1954_v4, 1  ;;  %v1978_v20 = vsel %vm234_vm2, %v1856_v57, -inf  ;;  %v1895_v63 = vmax.f32 %v1893_v53, %v1894_v61 }
 0x86a   :  { %v1979_v40 = vrot.slane %v1978_v20, 4  ;;  %v1890_v46 = vmax.f32 %v1888_v58, %v1889_v45  ;;  %v1878_v53 = vmax.f32 %v1876_v21, %v1877_v56 }
 0x86b   :  { %v1956_v51 = vmax.f32 %v1954_v4, %v1955_v34  ;;  %v1914_v16 = vsel %vm234_vm2, %v1864_v39, -inf  ;;  %v1896_v60 = vrot.slane %v1895_v63, 2 }
 0x86c   :  { %v1915_v24 = vrot.slane %v1914_v16, 4  ;;  %v1980_v55 = vmax.f32 %v1978_v20, %v1979_v40  ;;  %v1891_v19 = vrot.slane %v1890_v46, 1 }
 0x86d   :  { %v1995_v0 = vsel %vm780_vm15, %v1956_v51, %v1994_v15  ;;  %v1897_v27 = vmax.f32 %v1895_v63, %v1896_v60 }
 0x86e   :  { %v1996_v13 = vsel %vm782_vm1, %v1963_v28, %v1995_v0  ;;  %v1916_v7 = vmax.f32 %v1914_v16, %v1915_v24  ;;  %v1981_v41 = vrot.slane %v1980_v55, 2  ;;  %v1892_v12 = vmax.f32 %v1890_v46, %v1891_v19 }
 0x86f   :  { %v1816_v6 = vpop.permute.xlu0 %1815  ;;  %v1997_v48 = vsel %vm784_vm3, %v1970_v23, %v1996_v13  ;;  %v1898_v22 = vrot.slane %v1897_v27, 1  ;;  %v1906_v16 = vmax.f32 %v1904_v10, %v1905_v37 }
 0x870   :  { %v1829_v43 = vmul.f32 %v1816_v6, %v1693_v47  ;;  %v1917_v3 = vrot.slane %v1916_v7, 2  ;;  %v1982_v54 = vmax.f32 %v1980_v55, %v1981_v41  ;;  %v1924_v61 = vmax.f32 %v1892_v12, 0.0 }
 0x871   :  { %v1899_v35 = vmax.f32 %v1897_v27, %v1898_v22  ;;  %v1926_v0 = vmax.f32 %v1906_v16, 0.0 }
 0x872   :  { %v1838_v26 = vmul.f32 %v2930_v9, %v1829_v43  ;;  %v1885_v9 = vmax.f32 %v1883_v52, %v1884_v49  ;;  %v1918_v57 = vmax.f32 %v1916_v7, %v1917_v3  ;;  %v1983_v34 = vrot.slane %v1982_v54, 1 }
 0x873   :  { %v1925_v28 = vmax.f32 %v1899_v35, 0.0 }
 0x874   :  { %v1847_v31 = vadd.f32 %v2937_v14, %v1838_v26  ;;  %v1923_v62 = vmax.f32 %v1885_v9, 0.0  ;;  %v1919_v11 = vrot.slane %v1918_v57, 1  ;;  %v1984_v38 = vmax.f32 %v1982_v54, %v1983_v34 }
 0x876   :  { %v1855_v8 = vmax.f32 %v1847_v31, 0.0  ;;  %v1920_v45 = vmax.f32 %v1918_v57, %v1919_v11 }
 0x878   :  { %v1863_v30 = vadd.f32 %v1855_v8, %v2598_v5  ;;  %v1971_v25 = vsel %vm234_vm2, %v1855_v8, -inf  ;;  %v1922_v5 = vmax.f32 %v1878_v53, 0.0  ;;  %v1928_v43 = vmax.f32 %v1920_v45, 0.0 }
 0x879   :  { %v1972_v15 = vrot.slane %v1971_v25, 4 }
 0x87a   :  { %v1907_v14 = vsel %vm234_vm2, %v1863_v30, -inf  ;;  %v2009_v36 = vsel %vm776_vm13, %v1922_v5, %v1921_v32  ;;  %vm3028_vm13 = vcmask 1047559  }
 0x87b   :  { %v1908_v50 = vrot.slane %v1907_v14, 4  ;;  %v1973_v2 = vmax.f32 %v1971_v25, %v1972_v15  ;;  %v2010_v51 = vsel %vm778_vm14, %v1923_v62, %v2009_v36  ;;  %vm3029_vm14 = vmmov %vm3028_vm13 }
 0x87c   :  { %v2011_v20 = vsel %vm780_vm15, %v1924_v61, %v2010_v51  ;;  %vm3030_vm15 = vcmask 523264  }
 0x87d   :  { %v1909_v42 = vmax.f32 %v1907_v14, %v1908_v50  ;;  %v1974_v4 = vrot.slane %v1973_v2, 2  ;;  %v2012_v23 = vsel %vm782_vm1, %v1925_v28, %v2011_v20 }
 0x87e   :  { %v2013_v13 = vsel %vm784_vm3, %v1926_v0, %v2012_v23 }
 0x87f   :  { %v1910_v58 = vrot.slane %v1909_v42, 2  ;;  %v1975_v39 = vmax.f32 %v1973_v2, %v1974_v4 }
 0x881   :  { %v1976_v47 = vrot.slane %v1975_v39, 1  ;;  %v1911_v1 = vmax.f32 %v1909_v42, %v1910_v58 }
 0x883   :  { %v1912_v33 = vrot.slane %v1911_v1, 1  ;;  %v1977_v18 = vmax.f32 %v1975_v39, %v1976_v47 }
 0x885   :  { %v1913_v63 = vmax.f32 %v1911_v1, %v1912_v33  ;;  %v1998_v6 = vsel %vm786_vm4, %v1977_v18, %v1997_v48 }
 0x886   :  { %v1999_v24 = vsel %vm3028_vm13, %v1984_v38, %v1998_v6 }
 0x887   :  { %v1927_v40 = vmax.f32 %v1913_v63, 0.0 }
 0x889   :  { %v2014_v52 = vsel %vm786_vm4, %v1927_v40, %v2013_v13 }
 0x88a   :  { %v2015_v21 = vsel %vm3029_vm14, %v1928_v43, %v2014_v52 }
 0x88b   :  { %2016 = vrot.lane.b32.xlu2 %v2015_v21, %s2263_s23 }
 0x8e5   :  { %v2017_v48 = vpop.permute.xlu2 %2016 }
 0x8e6   :  { %v2019_v29 = vsel %vm234_vm2, %v1999_v24, %v2017_v48 }
 0x8e7   :  { %2020 = vst.msk [vmem:[#allocation2] sm:$0xff] %vm3030_vm15, %v2019_v29 }
 0x8e8   :  { %2031 = dma.vmem_to_hbm [thread:$0]  %s2027_s5, 128, %s2029_s17, [#allocation3]  }
 0x8e9   :  { %2261 = dma.done.wait [#allocation3], 128  }
 0x8ea   :  { %2262 = vsyncadd [#allocation3], 4294967168 }
 0x8eb   :  { %2036 = vsyncpa [#allocation3], 1 }

</bundles_post_ra>
